<compile_context>
chip_gen: v7x
topology: tpu7x:2x2x1
jax: 0.10.0
libtpu: 0.0.40
codegen_flags: <defaults>
</compile_context>

<pallas_src>
import numpy as np
import jax
import jax.numpy as jnp
from jax.experimental import pallas as pl
from jax.experimental.pallas import tpu as pltpu

# --- small synthetic dims consistent with the module ---
KH = KW = 3        # stand-in backbone conv kernel size
FE_OUT = 32        # fe_out_planes  (backbone.fc.in_features)
FEAT_DIM = 64      # feat_dim       (backbone.fc.out_features)
OUT_DIM = 6        # xyz(3) + wpqr(3)
OUT_PAD = 128      # lane-dense padded output width (sliced back to 6 in wrapper)


def _round_up(a, b):
    return (a + b - 1) // b * b


# ------------------------------------------------------------------
# Fused kernel: per batch-tile
#   3x3 'same' conv (3 block-Toeplitz MXU dots, bf16 operands / f32 acc)
#   -> +bias -> ReLU -> global average pool (H-sum in kernel, W-sum + fc
#   folded into wpf) -> +fc bias -> ReLU -> dropout(identity @ inference)
#   -> [fc_xyz | fc_wpqr] (pre-concatenated, lane-padded to 128)
# ------------------------------------------------------------------
def _mapnet_fused_kernel(x_ref, wt_ref, bconv_ref, wpf_ref, bfc_ref,
                         wpose_ref, bpose_ref, out_ref):
    # x_ref    : (Bt, Hp, Wp*C)     bf16, halo-padded, channels folded into lanes
    # wt_ref   : (KH, Wp*C, W*FE)   bf16 block-Toeplitz conv weights (one per kh)
    # bconv_ref: (1, W*FE)          f32, conv bias tiled over W
    # wpf_ref  : (W*FE, FEAT_DIM)   bf16, (avgpool-over-W * 1/(H*W)) @ backbone.fc
    # bfc_ref  : (1, FEAT_DIM)      f32
    # wpose_ref: (FEAT_DIM, 128)    bf16, [fc_xyz | fc_wpqr | 0-pad]
    # bpose_ref: (1, 128)           f32
    # out_ref  : (Bt, 128)          f32, lane-dense pose output block
    Bt, Hp, WpC = x_ref.shape
    H = Hp - (KH - 1)
    WFE = wt_ref.shape[-1]

    x = x_ref[...]                                    # bf16, lane-dense

    # Conv as 3 accumulated MXU dots: for each kh, rows (b, h) of the LHS are
    # the padded image rows h+kh (static sublane slice, no im2col scratch);
    # kw shifts are encoded in wt's band structure.
    acc = None
    for kh in range(KH):                              # static unroll -> 3 dots
        lhs = x[:, kh:kh + H, :].reshape(Bt * H, WpC)
        part = jnp.dot(lhs, wt_ref[kh], preferred_element_type=jnp.float32)
        acc = part if acc is None else acc + part     # (Bt*H, W*FE) f32

    conv = jnp.maximum(acc + bconv_ref[...], 0.0)     # bias + ReLU, f32

    # AdaptiveAvgPool2d(1): sum over H here (small sublane reduce); the W-sum,
    # the 1/(H*W) scale and backbone.fc are folded into wpf (MXU).
    row_sum = jnp.sum(conv.reshape(Bt, H, WFE), axis=1)          # (Bt, W*FE) f32

    f = jnp.dot(row_sum.astype(jnp.bfloat16), wpf_ref[...],
                preferred_element_type=jnp.float32)
    f = jnp.maximum(f + bfc_ref[...], 0.0)            # F.relu
    # F.dropout(p=0.5, training=False) is identity at inference.
    # TODO(synk): training-mode dropout (pltpu.prng_*) not implemented.

    poses = jnp.dot(f.astype(jnp.bfloat16), wpose_ref[...],
                    preferred_element_type=jnp.float32)
    out_ref[...] = poses + bpose_ref[...]             # dense (Bt, 128) store


# ------------------------------------------------------------------
# Wrapper
# ------------------------------------------------------------------
def _build_toeplitz(conv_w, W, Wp):
    """Block-Toeplitz expansion: wt[kh, (w+kw)*C+c, w*FE+f] = conv_w[kh,kw,c,f]."""
    KHs, KWs, C, F = conv_w.shape
    wt = jnp.zeros((KHs, Wp * C, W * F), conv_w.dtype)
    for kw in range(KWs):
        for w in range(W):
            wt = wt.at[:, (w + kw) * C:(w + kw + 1) * C,
                       w * F:(w + 1) * F].set(conv_w[:, kw])
    return wt


def mapnet_forward(x, params, b_tile=None):
    """x: (N, T, C, H, W) float32 -> poses (N, T, 6)."""
    conv_w, conv_b, fc_w, fc_b, xyz_w, xyz_b, wpqr_w, wpqr_b = params
    N, T, C, H, W = x.shape
    B = N * T
    Hp, Wp = H + KH - 1, W + KW - 1

    if b_tile is None:
        # Multiple of 8 (dense-sublane output store); single grid step for
        # small batches (v5e/v6e have one TC, so the grid is a serial loop).
        # TODO(synk): on v7x for large B pick b_tile so the step count is even
        # (2 equal tiles) to shard across both TensorCores.
        b_tile = min(_round_up(B, 8), 64)
    B_pad = _round_up(B, b_tile)
    nb = B_pad // b_tile

    # x.view(-1, C, H, W) -> NHWC -> 1-px halo pad -> fold C into lanes
    # ((B_pad, Hp, Wp*C) lane-dense) -> bf16. One fused XLA pass, and the
    # bf16 cast halves the HBM->VMEM DMA.
    xp = x.reshape(B, C, H, W).transpose(0, 2, 3, 1)
    xp = jnp.pad(xp, ((0, B_pad - B), (1, 1), (1, 1), (0, 0)))
    xp = xp.reshape(B_pad, Hp, Wp * C).astype(jnp.bfloat16)

    # Block-Toeplitz conv weights (kw shifts absorbed into the weight band).
    wt = _build_toeplitz(conv_w, W, Wp).astype(jnp.bfloat16)     # (KH, Wp*C, W*FE)
    bconv = jnp.tile(conv_b.reshape(1, 1, FE_OUT), (1, W, 1)).reshape(1, W * FE_OUT)

    # AdaptiveAvgPool2d(1) over W (+ 1/(H*W) scale) and backbone.fc are both
    # linear -> fold into a single (W*FE_OUT, FEAT_DIM) matrix.
    pool_sel = jnp.tile(jnp.eye(FE_OUT, dtype=jnp.float32), (W, 1)) / (H * W)
    wpf = (pool_sel @ fc_w).astype(jnp.bfloat16)                 # (W*FE, FEAT_DIM)
    bfc = fc_b.reshape(1, FEAT_DIM)

    # torch.cat((fc_xyz(x), fc_wpqr(x)), 1) == x @ [Wxyz | Wwpqr] + [bxyz | bwpqr],
    # zero-padded to 128 lanes so the kernel's output store is unmasked/lane-dense.
    wpose = jnp.zeros((FEAT_DIM, OUT_PAD), jnp.float32)
    wpose = wpose.at[:, :3].set(xyz_w).at[:, 3:6].set(wpqr_w).astype(jnp.bfloat16)
    bpose = jnp.zeros((1, OUT_PAD), jnp.float32)
    bpose = bpose.at[0, :3].set(xyz_b).at[0, 3:6].set(wpqr_b)

    out = pl.pallas_call(
        _mapnet_fused_kernel,
        out_shape=jax.ShapeDtypeStruct((B_pad, OUT_PAD), jnp.float32),
        grid=(nb,),
        in_specs=[
            pl.BlockSpec((b_tile, Hp, Wp * C), lambda i: (i, 0, 0)),
            pl.BlockSpec((KH, Wp * C, W * FE_OUT), lambda i: (0, 0, 0)),
            pl.BlockSpec((1, W * FE_OUT), lambda i: (0, 0)),
            pl.BlockSpec((W * FE_OUT, FEAT_DIM), lambda i: (0, 0)),
            pl.BlockSpec((1, FEAT_DIM), lambda i: (0, 0)),
            pl.BlockSpec((FEAT_DIM, OUT_PAD), lambda i: (0, 0)),
            pl.BlockSpec((1, OUT_PAD), lambda i: (0, 0)),
        ],
        out_specs=pl.BlockSpec((b_tile, OUT_PAD), lambda i: (i, 0)),
        compiler_params=pltpu.CompilerParams(
            dimension_semantics=("parallel",),
            vmem_limit_bytes=32 * 1024 * 1024,
        ),
    )(xp, wt, bconv, wpf, bfc, wpose, bpose)

    poses = out[:B, :OUT_DIM]
    return poses.reshape(N, T, OUT_DIM)       # poses.view(s[0], s[1], -1)


# ------------------------------------------------------------------
# Deterministic parameter init (kaiming_normal_ weights, zero biases)
# ------------------------------------------------------------------
def init_params(key, c_in):
    ks = jax.random.split(key, 4)
    conv_w = jax.random.normal(ks[0], (KH, KW, c_in, FE_OUT), jnp.float32) \
        * np.float32(np.sqrt(2.0 / (KH * KW * c_in)))
    conv_b = jnp.zeros((FE_OUT,), jnp.float32)
    fc_w = jax.random.normal(ks[1], (FE_OUT, FEAT_DIM), jnp.float32) \
        * np.float32(np.sqrt(2.0 / FE_OUT))
    fc_b = jnp.zeros((FEAT_DIM,), jnp.float32)
    xyz_w = jax.random.normal(ks[2], (FEAT_DIM, 3), jnp.float32) \
        * np.float32(np.sqrt(2.0 / FEAT_DIM))
    xyz_b = jnp.zeros((3,), jnp.float32)
    wpqr_w = jax.random.normal(ks[3], (FEAT_DIM, 3), jnp.float32) \
        * np.float32(np.sqrt(2.0 / FEAT_DIM))
    wpqr_b = jnp.zeros((3,), jnp.float32)
    return (conv_w, conv_b, fc_w, fc_b, xyz_w, xyz_b, wpqr_w, wpqr_b)


# ------------------------------------------------------------------
# Pure-JAX reference (same math, f32, no Pallas) for a correctness check
# ------------------------------------------------------------------
def reference_forward(x, params):
    conv_w, conv_b, fc_w, fc_b, xyz_w, xyz_b, wpqr_w, wpqr_b = params
    N, T, C, H, W = x.shape
    B = N * T
    xb = x.reshape(B, C, H, W).transpose(0, 2, 3, 1)
    feat = jax.lax.conv_general_dilated(
        xb, conv_w, window_strides=(1, 1), padding="SAME",
        dimension_numbers=("NHWC", "HWIO", "NHWC"))
    feat = jax.nn.relu(feat + conv_b)
    pooled = feat.mean(axis=(1, 2))
    f = jax.nn.relu(pooled @ fc_w + fc_b)
    xyz = f @ xyz_w + xyz_b
    wpqr = f @ wpqr_w + wpqr_b
    return jnp.concatenate([xyz, wpqr], axis=1).reshape(N, T, OUT_DIM)


if __name__ == "__main__":
    key = jax.random.PRNGKey(0)
    kx, kp = jax.random.split(key)

    N, T, C, H, W = 2, 2, 4, 16, 16
    x = jax.random.normal(kx, (N, T, C, H, W), jnp.float32)
    params = init_params(kp, C)

    fwd = jax.jit(mapnet_forward)
    poses = jax.block_until_ready(fwd(x, params))

    ref = reference_forward(x, params)
    assert poses.shape == (N, T, OUT_DIM), poses.shape
    if not np.allclose(np.asarray(poses), np.asarray(ref), rtol=2e-2, atol=2e-2):
        raise AssertionError("Pallas kernel output mismatch vs JAX reference")

    print("KERNEL_OK")
</pallas_src>

<mosaic_0001>
module attributes {stable_mosaic.version = 11 : i64} {
  func.func @_mapnet_fused_kernel(%arg0: i32, %arg1: memref<8x18x72xbf16, #tpu.memory_space<vmem>>, %arg2: memref<3x72x512xbf16, #tpu.memory_space<vmem>>, %arg3: memref<1x512xf32, #tpu.memory_space<vmem>>, %arg4: memref<512x64xbf16, #tpu.memory_space<vmem>>, %arg5: memref<1x64xf32, #tpu.memory_space<vmem>>, %arg6: memref<64x128xbf16, #tpu.memory_space<vmem>>, %arg7: memref<1x128xf32, #tpu.memory_space<vmem>>, %arg8: memref<8x128xf32, #tpu.memory_space<vmem>>) attributes {dimension_semantics = [#tpu.dimension_semantics<parallel>], iteration_bounds = array<i64: 1>, scalar_prefetch = 0 : i64, scratch_operands = 0 : i64, tpu.core_type = #tpu.core_type<tc>, window_params = [{transform_indices = @transform_0, window_bounds = array<i64: 8, 18, 72>}, {pipeline_mode = #tpu.pipeline_mode<synchronous>, transform_indices = @transform_1, window_bounds = array<i64: 3, 72, 512>}, {pipeline_mode = #tpu.pipeline_mode<synchronous>, transform_indices = @transform_2, window_bounds = array<i64: 1, 512>}, {pipeline_mode = #tpu.pipeline_mode<synchronous>, transform_indices = @transform_3, window_bounds = array<i64: 512, 64>}, {pipeline_mode = #tpu.pipeline_mode<synchronous>, transform_indices = @transform_4, window_bounds = array<i64: 1, 64>}, {pipeline_mode = #tpu.pipeline_mode<synchronous>, transform_indices = @transform_5, window_bounds = array<i64: 64, 128>}, {pipeline_mode = #tpu.pipeline_mode<synchronous>, transform_indices = @transform_6, window_bounds = array<i64: 1, 128>}, {transform_indices = @transform_7, window_bounds = array<i64: 8, 128>}]} {
    %c0 = arith.constant 0 : index
    %c0_0 = arith.constant 0 : index
    %c0_1 = arith.constant 0 : index
    %0 = vector.load %arg1[%c0, %c0_0, %c0_1] : memref<8x18x72xbf16, #tpu.memory_space<vmem>>, vector<8x18x72xbf16>
    %1 = vector.extract_strided_slice %0 {offsets = [0, 0, 0], sizes = [8, 16, 72], strides = [1, 1, 1]} : vector<8x18x72xbf16> to vector<8x16x72xbf16>
    %2 = vector.shape_cast %1 : vector<8x16x72xbf16> to vector<128x72xbf16>
    %c0_2 = arith.constant 0 : index
    %c0_3 = arith.constant 0 : index
    %c0_4 = arith.constant 0 : index
    %3 = vector.load %arg2[%c0_2, %c0_3, %c0_4] : memref<3x72x512xbf16, #tpu.memory_space<vmem>>, vector<1x72x512xbf16>
    %4 = vector.shape_cast %3 : vector<1x72x512xbf16> to vector<72x512xbf16>
    %cst = arith.constant dense<0.000000e+00> : vector<128x512xf32>
    %5 = tpu.matmul %2, %4, %cst {dimension_numbers = #tpu.dot_dimension_numbers<[1], [0], [0], [1], [0, 0, 1, 1], [], []>} : vector<128x72xbf16>, vector<72x512xbf16>, vector<128x512xf32> -> vector<128x512xf32>
    %6 = vector.extract_strided_slice %0 {offsets = [0, 1, 0], sizes = [8, 16, 72], strides = [1, 1, 1]} : vector<8x18x72xbf16> to vector<8x16x72xbf16>
    %7 = vector.shape_cast %6 : vector<8x16x72xbf16> to vector<128x72xbf16>
    %c1 = arith.constant 1 : index
    %c0_5 = arith.constant 0 : index
    %c0_6 = arith.constant 0 : index
    %8 = vector.load %arg2[%c1, %c0_5, %c0_6] : memref<3x72x512xbf16, #tpu.memory_space<vmem>>, vector<1x72x512xbf16>
    %9 = vector.shape_cast %8 : vector<1x72x512xbf16> to vector<72x512xbf16>
    %cst_7 = arith.constant dense<0.000000e+00> : vector<128x512xf32>
    %10 = tpu.matmul %7, %9, %cst_7 {dimension_numbers = #tpu.dot_dimension_numbers<[1], [0], [0], [1], [0, 0, 1, 1], [], []>} : vector<128x72xbf16>, vector<72x512xbf16>, vector<128x512xf32> -> vector<128x512xf32>
    %11 = arith.addf %5, %10 : vector<128x512xf32>
    %12 = vector.extract_strided_slice %0 {offsets = [0, 2, 0], sizes = [8, 16, 72], strides = [1, 1, 1]} : vector<8x18x72xbf16> to vector<8x16x72xbf16>
    %13 = vector.shape_cast %12 : vector<8x16x72xbf16> to vector<128x72xbf16>
    %c2 = arith.constant 2 : index
    %c0_8 = arith.constant 0 : index
    %c0_9 = arith.constant 0 : index
    %14 = vector.load %arg2[%c2, %c0_8, %c0_9] : memref<3x72x512xbf16, #tpu.memory_space<vmem>>, vector<1x72x512xbf16>
    %15 = vector.shape_cast %14 : vector<1x72x512xbf16> to vector<72x512xbf16>
    %cst_10 = arith.constant dense<0.000000e+00> : vector<128x512xf32>
    %16 = tpu.matmul %13, %15, %cst_10 {dimension_numbers = #tpu.dot_dimension_numbers<[1], [0], [0], [1], [0, 0, 1, 1], [], []>} : vector<128x72xbf16>, vector<72x512xbf16>, vector<128x512xf32> -> vector<128x512xf32>
    %17 = arith.addf %11, %16 : vector<128x512xf32>
    %c0_11 = arith.constant 0 : index
    %c0_12 = arith.constant 0 : index
    %18 = vector.load %arg3[%c0_11, %c0_12] : memref<1x512xf32, #tpu.memory_space<vmem>>, vector<1x512xf32>
    %19 = vector.broadcast %18 : vector<1x512xf32> to vector<128x512xf32>
    %20 = arith.addf %17, %19 : vector<128x512xf32>
    %cst_13 = arith.constant 0.000000e+00 : f32
    %21 = vector.broadcast %cst_13 : f32 to vector<128x512xf32>
    %22 = arith.maximumf %20, %21 : vector<128x512xf32>
    %23 = vector.shape_cast %22 : vector<128x512xf32> to vector<8x16x512xf32>
    %cst_14 = arith.constant dense<0.000000e+00> : vector<8x512xf32>
    %24 = vector.multi_reduction <add>, %23, %cst_14 [1] : vector<8x16x512xf32> to vector<8x512xf32>
    %25 = arith.truncf %24 : vector<8x512xf32> to vector<8x512xbf16>
    %c0_15 = arith.constant 0 : index
    %c0_16 = arith.constant 0 : index
    %26 = vector.load %arg4[%c0_15, %c0_16] : memref<512x64xbf16, #tpu.memory_space<vmem>>, vector<512x64xbf16>
    %cst_17 = arith.constant dense<0.000000e+00> : vector<8x64xf32>
    %27 = tpu.matmul %25, %26, %cst_17 {dimension_numbers = #tpu.dot_dimension_numbers<[1], [0], [0], [1], [0, 0, 1, 1], [], []>} : vector<8x512xbf16>, vector<512x64xbf16>, vector<8x64xf32> -> vector<8x64xf32>
    %c0_18 = arith.constant 0 : index
    %c0_19 = arith.constant 0 : index
    %28 = vector.load %arg5[%c0_18, %c0_19] : memref<1x64xf32, #tpu.memory_space<vmem>>, vector<1x64xf32>
    %29 = vector.broadcast %28 : vector<1x64xf32> to vector<8x64xf32>
    %30 = arith.addf %27, %29 : vector<8x64xf32>
    %cst_20 = arith.constant 0.000000e+00 : f32
    %31 = vector.broadcast %cst_20 : f32 to vector<8x64xf32>
    %32 = arith.maximumf %30, %31 : vector<8x64xf32>
    %33 = arith.truncf %32 : vector<8x64xf32> to vector<8x64xbf16>
    %c0_21 = arith.constant 0 : index
    %c0_22 = arith.constant 0 : index
    %34 = vector.load %arg6[%c0_21, %c0_22] : memref<64x128xbf16, #tpu.memory_space<vmem>>, vector<64x128xbf16>
    %cst_23 = arith.constant dense<0.000000e+00> : vector<8x128xf32>
    %35 = tpu.matmul %33, %34, %cst_23 {dimension_numbers = #tpu.dot_dimension_numbers<[1], [0], [0], [1], [0, 0, 1, 1], [], []>} : vector<8x64xbf16>, vector<64x128xbf16>, vector<8x128xf32> -> vector<8x128xf32>
    %c0_24 = arith.constant 0 : index
    %c0_25 = arith.constant 0 : index
    %36 = vector.load %arg7[%c0_24, %c0_25] : memref<1x128xf32, #tpu.memory_space<vmem>>, vector<1x128xf32>
    %37 = vector.broadcast %36 : vector<1x128xf32> to vector<8x128xf32>
    %38 = arith.addf %35, %37 : vector<8x128xf32>
    %c0_26 = arith.constant 0 : index
    %c0_27 = arith.constant 0 : index
    %39 = vector.load %arg8[%c0_26, %c0_27] : memref<8x128xf32, #tpu.memory_space<vmem>>, vector<8x128xf32>
    tpu.vector_store %arg8[%c0_26, %c0_27], %38 {strides = array<i32>} : memref<8x128xf32, #tpu.memory_space<vmem>>, vector<8x128xf32>,
    return
  }
  func.func @transform_0(%arg0: i32) -> (i32, i32, i32) {
    %c0_i32 = arith.constant 0 : i32
    %c0_i32_0 = arith.constant 0 : i32
    %c0_i32_1 = arith.constant 0 : i32
    return %arg0, %c0_i32, %c0_i32_0 : i32, i32, i32
  }
  func.func @transform_1(%arg0: i32) -> (i32, i32, i32) {
    %c0_i32 = arith.constant 0 : i32
    %c0_i32_0 = arith.constant 0 : i32
    %c0_i32_1 = arith.constant 0 : i32
    %c0_i32_2 = arith.constant 0 : i32
    return %c0_i32, %c0_i32_0, %c0_i32_1 : i32, i32, i32
  }
  func.func @transform_2(%arg0: i32) -> (i32, i32) {
    %c0_i32 = arith.constant 0 : i32
    %c0_i32_0 = arith.constant 0 : i32
    %c0_i32_1 = arith.constant 0 : i32
    return %c0_i32, %c0_i32_0 : i32, i32
  }
  func.func @transform_3(%arg0: i32) -> (i32, i32) {
    %c0_i32 = arith.constant 0 : i32
    %c0_i32_0 = arith.constant 0 : i32
    %c0_i32_1 = arith.constant 0 : i32
    return %c0_i32, %c0_i32_0 : i32, i32
  }
  func.func @transform_4(%arg0: i32) -> (i32, i32) {
    %c0_i32 = arith.constant 0 : i32
    %c0_i32_0 = arith.constant 0 : i32
    %c0_i32_1 = arith.constant 0 : i32
    return %c0_i32, %c0_i32_0 : i32, i32
  }
  func.func @transform_5(%arg0: i32) -> (i32, i32) {
    %c0_i32 = arith.constant 0 : i32
    %c0_i32_0 = arith.constant 0 : i32
    %c0_i32_1 = arith.constant 0 : i32
    return %c0_i32, %c0_i32_0 : i32, i32
  }
  func.func @transform_6(%arg0: i32) -> (i32, i32) {
    %c0_i32 = arith.constant 0 : i32
    %c0_i32_0 = arith.constant 0 : i32
    %c0_i32_1 = arith.constant 0 : i32
    return %c0_i32, %c0_i32_0 : i32, i32
  }
  func.func @transform_7(%arg0: i32) -> (i32, i32) {
    %c0_i32 = arith.constant 0 : i32
    %c0_i32_0 = arith.constant 0 : i32
    return %arg0, %c0_i32 : i32, i32
  }
}

</mosaic_0001>

<bundles_post_ra>
// kernel: mapnet_forward.1
= control target key start
LH: loop header
LB: loop body
LE: loop exit
PB: predicated region body
PF: predicated region fallthrough
CT: control target
= control target key end

     0   :  { %v3066_v1 = vmov 0   ;;  %vm69_vm0 = vsmask.f32 3328  ;;  %vm70_vm1 = vsmask.f32 7440  ;;  %vm422_vm2 = vcmask 1043456   ;;  %s4153_s1 = inlined_call_operand.vmem [shape: bf16[3,72,512], index: 1, kind: input, shape index: {}]   ;;  %s4154_s0 = inlined_call_operand.vmem [shape: bf16[8,18,72], index: 0, kind: input, shape index: {}]   ;;  %s4155_s3 = inlined_call_operand.vmem [shape: bf16[512,64], index: 3, kind: input, shape index: {}]   ;;  %s4156_s2 = inlined_call_operand.vmem [shape: f32[1,512], index: 2, kind: input, shape index: {}]   ;;  %s4157_s5 = inlined_call_operand.vmem [shape: bf16[64,128], index: 5, kind: input, shape index: {}]   ;;  %s4158_s4 = inlined_call_operand.vmem [shape: f32[1,64], index: 4, kind: input, shape index: {}]   ;;  %s4159_s6 = inlined_call_operand.vmem [shape: f32[1,128], index: 6, kind: input, shape index: {}]   ;;  %s4160_s7 = inlined_call_operand.vmem [shape: f32[8,128], index: 7, kind: output, shape index: {}]  }
   0x1   :  { %v2938_v0 = vld [vmem:[%s4153_s1 + $0x94] ss:$16 sps:$4 sm:$0xff]   ;;  %467 = vmatprep.mubr.bf16.mxu0 %v3066_v1  ;;  %580 = vmatprep.mubr.bf16.mxu1 %v3066_v1  ;;  %v2940_v2 = vld [vmem:[%s4153_s1 + $0x9c] ss:$16 sps:$4 sm:$0xff]   ;;  %v2942_v3 = vld [vmem:[%s4153_s1 + $0x90] ss:$16 sps:$4 sm:$0xff]  }
   0x2   :  { %435 = vmatprep.subr.bf16.mxu0 %v2938_v0  ;;  %v2943_v4 = vld [vmem:[%s4153_s1 + $0x98] ss:$16 sps:$4 sm:$0xff]   ;;  %548 = vmatprep.subr.bf16.mxu1 %v2940_v2  ;;  %v2944_v5 = vld [vmem:[%s4153_s1 + $0xb4] ss:$16 sps:$4 sm:$0xff]   ;;  %v2946_v6 = vld [vmem:[%s4153_s1 + $0xbc] ss:$16 sps:$4 sm:$0xff]  }
   0x3   :  { %436 = vmatpush1.bf16.msra.mxu0 %v2942_v3  ;;  %549 = vmatpush1.bf16.msra.mxu1 %v2943_v4  ;;  %v2948_v7 = vld [vmem:[%s4153_s1 + $0xb0] ss:$16 sps:$4 sm:$0xff]   ;;  %v2949_v8 = vld [vmem:[%s4153_s1 + $0xb8] ss:$16 sps:$4 sm:$0xff]   ;;  %v2950_v9 = vld [vmem:[%s4153_s1 + $0xd4] ss:$16 sps:$4 sm:$0xff]  }
   0x4   :  { %437 = vmatprep.subr.bf16.mxu0 %v2944_v5  ;;  %550 = vmatprep.subr.bf16.mxu1 %v2946_v6  ;;  %v2952_v10 = vld [vmem:[%s4153_s1 + $0xdc] ss:$16 sps:$4 sm:$0xff]   ;;  %v2954_v11 = vld [vmem:[%s4153_s1 + $0xd0] ss:$16 sps:$4 sm:$0xff]   ;;  %v2955_v12 = vld [vmem:[%s4153_s1 + $0xd8] ss:$16 sps:$4 sm:$0xff]  }
   0x5   :  { %v2956_v13 = vld [vmem:[%s4153_s1 + $0xf4] ss:$16 sps:$4 sm:$0xff]   ;;  %v2958_v14 = vld [vmem:[%s4153_s1 + $0xfc] ss:$16 sps:$4 sm:$0xff]   ;;  %v2960_v15 = vld [vmem:[%s4153_s1 + $0xf0] ss:$16 sps:$4 sm:$0xff]  }
   0x6   :  { %v2961_v16 = vld [vmem:[%s4153_s1 + $0xf8] ss:$16 sps:$4 sm:$0xff]   ;;  %v2541_v17 = vld [vmem:[%s4153_s1 + $0x110] sm:$0xff]  ;;  %v3168_v20 = vld [vmem:[%s4154_s0] sm:$0xf]  ;;  %vm397_vm3 = vcmask 588800  }
   0x7   :  { %438 = vmatpush1.bf16.msra.mxu0 %v2948_v7  ;;  %551 = vmatpush1.bf16.msra.mxu1 %v2949_v8  ;;  %v2542_v18 = vld [vmem:[%s4153_s1 + $0x118] sm:$0xff]  ;;  %v2567_v19 = vcombine.low %v2541_v17, %v2541_v17  ;;  %v3173_v21 = vld [vmem:[%s4154_s0 + $0x4] sm:$0xf]  ;;  %v2568_v22 = vcombine.high %v2541_v17, %v2541_v17  ;;  %v3178_v24 = vld [vmem:[%s4154_s0 + $0x8] sm:$0x1]  ;;  %v73_v25 = vshrl.u32 %v3168_v20, 16 }
   0x8   :  { %439 = vmatprep.subr.bf16.mxu0 %v2950_v9  ;;  %552 = vmatprep.subr.bf16.mxu1 %v2952_v10  ;;  %v2569_v23 = vcombine.low %v2542_v18, %v2542_v18  ;;  %v76_v26 = vshll.u32 %v3168_v20, 16  ;;  %v2570_v27 = vcombine.high %v2542_v18, %v2542_v18  ;;  %v82_v28 = vshll.u32 %v3173_v21, 16  ;;  %vm3189_vm4 = vmor %vm69_vm0, %vm70_vm1  ;;  %v2968_v40 = vld [vmem:[%s4153_s1 + $0x4] ss:$16 sps:$4 sm:$0xff]   ;;  %v2971_v41 = vld [vmem:[%s4153_s1 + $0xc] ss:$16 sps:$4 sm:$0xff]  }
   0x9   :  { %v86_v29 = vshrl.u32 %v3173_v21, 16  ;;  %v92_v30 = vshll.u32 %v3178_v24, 16  ;;  %v75_v31 = vrot.slane %v73_v25, 4  ;;  %v424_v33 = vsel %vm422_vm2, %v2567_v19, 0  ;;  %v3208_v44 = vld [vmem:[%s4154_s0 + $0xc] sm:$0xf] }
   0xa   :  { %v78_v32 = vrot.slane %v76_v26, 5  ;;  %v430_v34 = vsel %vm422_vm2, %v2569_v23, 0  ;;  %v84_v36 = vrot.slane %v82_v28, 5  ;;  %v3201_v42 = vcombine.low %v3168_v20, %v3173_v21  ;;  %v3213_v45 = vld [vmem:[%s4154_s0 + $0x10] sm:$0xf] }
   0xb   :  { %440 = vmatpush1.bf16.msra.mxu0 %v2954_v11  ;;  %553 = vmatpush1.bf16.msra.mxu1 %v2955_v12  ;;  %v88_v37 = vrot.slane %v86_v29, 4  ;;  %v94_v39 = vrot.slane %v92_v30, 5  ;;  %v3218_v46 = vld [vmem:[%s4154_s0 + $0x14] sm:$0x1]  ;;  %v97_v48 = vshrl.u32 %v3208_v44, 16  ;;  %v100_v49 = vshll.u32 %v3208_v44, 16 }
   0xc   :  { %441 = vmatprep.subr.bf16.mxu0 %v2956_v13  ;;  %554 = vmatprep.subr.bf16.mxu1 %v2958_v14  ;;  %v79_v38 = vor.u32 %v78_v32, %v75_v31  ;;  %v106_v50 = vshll.u32 %v3213_v45, 16  ;;  %v2966_v52 = vld [vmem:[%s4153_s1] ss:$16 sps:$4 sm:$0xff]   ;;  %v110_v53 = vshrl.u32 %v3213_v45, 16  ;;  %v116_v54 = vshll.u32 %v3218_v46, 16 }
   0xd   :  { %v89_v43 = vor.u32 %v88_v37, %v84_v36  ;;  %v3230_v55 = vcombine.low %v3208_v44, %v3213_v45  ;;  %v2969_v57 = vld [vmem:[%s4153_s1 + $0x8] ss:$16 sps:$4 sm:$0xff]   ;;  %v99_v58 = vrot.slane %v97_v48, 4  ;;  %v102_v59 = vrot.slane %v100_v49, 5  ;;  %v2974_v0 = vld [vmem:[%s4153_s1 + $0x24] ss:$16 sps:$4 sm:$0xff]  }
   0xe   :  { %v80_v47 = vrot.slane %v79_v38, 4  ;;  %v108_v60 = vrot.slane %v106_v50, 5  ;;  %v112_v62 = vrot.slane %v110_v53, 4  ;;  %v118_v63 = vrot.slane %v116_v54, 5  ;;  %v2977_v2 = vld [vmem:[%s4153_s1 + $0x2c] ss:$16 sps:$4 sm:$0xff]  }
   0xf   :  { %442 = vmatpush1.bf16.msra.mxu0 %v2960_v15  ;;  %555 = vmatpush1.bf16.msra.mxu1 %v2961_v16  ;;  %v90_v51 = vrot.slane %v89_v43, 4  ;;  %v103_v4 = vor.u32 %v102_v59, %v99_v58  ;;  %v3248_v5 = vld [vmem:[%s4154_s0 + $0x18] sm:$0xf]  ;;  %v3253_v6 = vld [vmem:[%s4154_s0 + $0x1c] sm:$0xf]  ;;  %vm1061_vm5 = vcmask 1042432  }
  0x10   :  { %2571 = vmatprep.subr.msk.bf16.mxu0 %vm422_vm2, %v2568_v22  ;;  %2580 = vmatprep.subr.msk.bf16.mxu1 %vm422_vm2, %v2570_v27  ;;  %v85_v56 = vsel %vm3189_vm4, %v80_v47, %v84_v36  ;;  %v3258_v7 = vld [vmem:[%s4154_s0 + $0x20] sm:$0x1]  ;;  %v113_v8 = vor.u32 %v112_v62, %v108_v60  ;;  %v121_v10 = vshrl.u32 %v3248_v5, 16  ;;  %v124_v11 = vshll.u32 %v3248_v5, 16  ;;  %v3269_v13 = vld [vmem:[%s4154_s0 + $0x24] sm:$0xf] }
  0x11   :  { %v95_v61 = vsel %vm3189_vm4, %v90_v51, %v94_v39  ;;  %v2972_v9 = vld [vmem:[%s4153_s1 + $0x20] ss:$16 sps:$4 sm:$0xff]   ;;  %v130_v12 = vshll.u32 %v3253_v6, 16  ;;  %v104_v14 = vrot.slane %v103_v4, 4  ;;  %v134_v15 = vshrl.u32 %v3253_v6, 16 }
  0x12   :  { %v2543_v3 = vcombine.low %v85_v56, %v95_v61  ;;  %v140_v16 = vshll.u32 %v3258_v7, 16  ;;  %v3278_v17 = vld [vmem:[%s4154_s0 + $0x28] sm:$0xf]  ;;  %v145_v18 = vshrl.u32 %v3269_v13, 16  ;;  %v114_v19 = vrot.slane %v113_v8, 4 }
  0x13   :  { %444 = vmatpush1.bf16.msra.mxu0 %v424_v33  ;;  %557 = vmatpush1.bf16.msra.mxu1 %v430_v34  ;;  %v2975_v22 = vld [vmem:[%s4153_s1 + $0x28] ss:$16 sps:$4 sm:$0xff]   ;;  %v123_v23 = vrot.slane %v121_v10, 4  ;;  %v126_v25 = vrot.slane %v124_v11, 5  ;;  %v3284_v26 = vrot.slane %v130_v12, 5  ;;  %v109_v27 = vsel %vm3189_vm4, %v104_v14, %v108_v60 }
  0x14   :  { %827 = vmatprep.subr.bf16.mxu0 %v2968_v40  ;;  %940 = vmatprep.subr.bf16.mxu1 %v2971_v41  ;;  %v136_v28 = vrot.slane %v134_v15, 4  ;;  %v3293_v29 = vld [vmem:[%s4154_s0 + $0x2c] sm:$0x1]  ;;  %v147_v30 = vrot.slane %v145_v18, 4  ;;  %v119_v31 = vsel %vm3189_vm4, %v114_v19, %v118_v63  ;;  %v148_v33 = vshll.u32 %v3269_v13, 16 }
  0x15   :  { %v127_v32 = vor.u32 %v126_v25, %v123_v23  ;;  %v154_v34 = vshll.u32 %v3278_v17, 16  ;;  %v2980_v36 = vld [vmem:[%s4153_s1 + $0x44] ss:$16 sps:$4 sm:$0xff]   ;;  %v2544_v37 = vcombine.low %v109_v27, %v119_v31  ;;  %v142_v39 = vrot.slane %v140_v16, 5  ;;  %v2978_v41 = vld [vmem:[%s4153_s1 + $0x40] ss:$16 sps:$4 sm:$0xff]  }
  0x16   :  { %2572 = vmatmul.mubr.msk.bf16.vlgmr.msra.gmra.mrb[0].mxu0 %vm397_vm3, %v2543_v3  ;;  %2581 = vmatmul.mubr.msk.bf16.vlgmr.msra.gmra.mrb[0].mxu1 %vm397_vm3, %v2543_v3  ;;  %v137_v38 = vor.u32 %v136_v28, %v3284_v26  ;;  %v158_v40 = vshrl.u32 %v3278_v17, 16  ;;  %v2981_v43 = vld [vmem:[%s4153_s1 + $0x48] ss:$16 sps:$4 sm:$0xff]   ;;  %v2983_v47 = vld [vmem:[%s4153_s1 + $0x4c] ss:$16 sps:$4 sm:$0xff]   ;;  %v150_v49 = vrot.slane %v148_v33, 5 }
  0x17   :  { %828 = vmatpush1.bf16.msra.mxu0 %v2966_v52  ;;  %941 = vmatpush1.bf16.msra.mxu1 %v2969_v57  ;;  %v128_v48 = vrot.slane %v127_v32, 4  ;;  %v3313_v50 = vrot.slane %v154_v34, 5  ;;  %v3318_v51 = vld [vmem:[%s4154_s0 + $0x30] sm:$0xf]  ;;  %v3322_v52 = vcombine.low %v3248_v5, %v3253_v6  ;;  %v164_v56 = vshll.u32 %v3293_v29, 16 }
  0x18   :  { %477 = vmatprep.mubr.bf16.mxu0 %v3066_v1  ;;  %590 = vmatprep.mubr.bf16.mxu1 %v3066_v1  ;;  %v138_v53 = vrot.slane %v137_v38, 4  ;;  %v160_v54 = vrot.slane %v158_v40, 4  ;;  %v3328_v57 = vld [vmem:[%s4154_s0 + $0x34] sm:$0xf]  ;;  %v169_v58 = vshrl.u32 %v3318_v51, 16  ;;  %v151_v59 = vor.u32 %v150_v49, %v147_v30 }
  0x19   :  { %829 = vmatprep.subr.bf16.mxu0 %v2974_v0  ;;  %942 = vmatprep.subr.bf16.mxu1 %v2977_v2  ;;  %v3334_v60 = vld [vmem:[%s4154_s0 + $0x38] sm:$0x1]  ;;  %v172_v61 = vshll.u32 %v3318_v51, 16  ;;  %v178_v62 = vshll.u32 %v3328_v57, 16  ;;  %v182_v2 = vshrl.u32 %v3328_v57, 16  ;;  %v133_v8 = vsel %vm3189_vm4, %v128_v48, %v3284_v26 }
  0x1a   :  { %v161_v63 = vor.u32 %v160_v54, %v3313_v50  ;;  %v171_v0 = vrot.slane %v169_v58, 4  ;;  %v2984_v3 = vld [vmem:[%s4153_s1 + $0x60] ss:$16 sps:$4 sm:$0xff]   ;;  %v2986_v4 = vld [vmem:[%s4153_s1 + $0x64] ss:$16 sps:$4 sm:$0xff]   ;;  %v152_v14 = vrot.slane %v151_v59, 4 }
  0x1b   :  { %830 = vmatpush1.bf16.msra.mxu0 %v2972_v9  ;;  %943 = vmatpush1.bf16.msra.mxu1 %v2975_v22  ;;  %v143_v9 = vsel %vm3189_vm4, %v138_v53, %v142_v39  ;;  %v174_v10 = vrot.slane %v172_v61, 5  ;;  %v3355_v11 = vrot.slane %v178_v62, 5  ;;  %v3360_v12 = vld [vmem:[%s4154_s0 + $0x3c] sm:$0xf]  ;;  %v166_v15 = vrot.slane %v164_v56, 5  ;;  %v67_v53 = vld [vmem:[%s4153_s1 + $0x80] sm:$0xff] }
  0x1c   :  { %831 = vmatprep.subr.bf16.mxu0 %v2980_v36  ;;  %944 = vmatprep.subr.bf16.mxu1 %v2983_v47  ;;  %v184_v16 = vrot.slane %v182_v2, 4  ;;  %v3365_v18 = vld [vmem:[%s4154_s0 + $0x40] sm:$0xf]  ;;  %v193_v19 = vshrl.u32 %v3360_v12, 16  ;;  %v162_v22 = vrot.slane %v161_v63, 4  ;;  %v188_v23 = vshll.u32 %v3334_v60, 16 }
  0x1d   :  { %v196_v25 = vshll.u32 %v3360_v12, 16  ;;  %v202_v26 = vshll.u32 %v3365_v18, 16  ;;  %v2987_v27 = vld [vmem:[%s4153_s1 + $0x68] ss:$16 sps:$4 sm:$0xff]   ;;  %v2545_v28 = vcombine.low %v133_v8, %v143_v9  ;;  %v175_v30 = vor.u32 %v174_v10, %v171_v0  ;;  %v2989_v32 = vld [vmem:[%s4153_s1 + $0x6c] ss:$16 sps:$4 sm:$0xff]  }
  0x1e   :  { %2573 = vmatmul.mubr.msk.bf16.gmra.mrb[4].mxu0 %vm397_vm3, %v2544_v37  ;;  %2582 = vmatmul.mubr.msk.bf16.gmra.mrb[4].mxu1 %vm397_vm3, %v2544_v37  ;;  %v185_v31 = vor.u32 %v184_v16, %v3355_v11  ;;  %v3381_v33 = vld [vmem:[%s4154_s0 + $0x48] sm:$0xf]  ;;  %v3386_v34 = vld [vmem:[%s4154_s0 + $0x44] sm:$0x1]  ;;  %v195_v36 = vrot.slane %v193_v19, 4  ;;  %v206_v39 = vshrl.u32 %v3365_v18, 16  ;;  %v167_v47 = vsel %vm3189_vm4, %v162_v22, %v166_v15 }
  0x1f   :  { %487 = vmatprep.mubr.bf16.mxu0 %v3066_v1  ;;  %600 = vmatprep.mubr.bf16.mxu1 %v3066_v1  ;;  %v198_v37 = vrot.slane %v196_v25, 5  ;;  %v3388_v38 = vrot.slane %v202_v26, 5  ;;  %v3394_v40 = vld [vmem:[%s4154_s0 + $0x4c] sm:$0xf]  ;;  %v190_v48 = vrot.slane %v188_v23, 5  ;;  %v220_v49 = vshll.u32 %v3381_v33, 16 }
  0x20   :  { %832 = vmatpush1.bf16.msra.mxu0 %v2978_v41  ;;  %945 = vmatpush1.bf16.msra.mxu1 %v2981_v43  ;;  %v217_v41 = vshrl.u32 %v3381_v33, 16  ;;  %v157_v43 = vsel %vm3189_vm4, %v152_v14, %v3313_v50  ;;  %v176_v54 = vrot.slane %v175_v30, 4  ;;  %v186_v56 = vrot.slane %v185_v31, 4  ;;  %v68_v59 = vld [vmem:[%s4153_s1 + $0x88] sm:$0xff]  ;;  %v2997_v14 = vld [vmem:[%s4153_s1 + $0x124] ss:$16 sps:$4 sm:$0xff]  }
  0x21   :  { %833 = vmatprep.subr.bf16.mxu0 %v2986_v4  ;;  %946 = vmatprep.subr.bf16.mxu1 %v2989_v32  ;;  %v208_v58 = vrot.slane %v206_v39, 4  ;;  %v212_v50 = vshll.u32 %v3386_v34, 16  ;;  %v199_v61 = vor.u32 %v198_v37, %v195_v36  ;;  %v226_v63 = vshll.u32 %v3394_v40, 16  ;;  %v3428_v22 = vld [vmem:[%s4154_s0 + $0x50] sm:$0x1] }
  0x22   :  { %v219_v62 = vrot.slane %v217_v41, 4  ;;  %v222_v2 = vrot.slane %v220_v49, 5  ;;  %v2614_v4 = vcombine.high %v67_v53, %v67_v53  ;;  %v2546_v8 = vcombine.low %v157_v43, %v167_v47  ;;  %v3000_v36 = vld [vmem:[%s4153_s1 + $0x12c] ss:$16 sps:$4 sm:$0xff]   ;;  %v3451_v43 = vld [vmem:[%s4154_s0 + $0x58] sm:$0xf] }
  0x23   :  { %v209_v0 = vor.u32 %v208_v58, %v3388_v38  ;;  %v2613_v9 = vcombine.low %v67_v53, %v67_v53  ;;  %v2616_v10 = vcombine.high %v68_v59, %v68_v59  ;;  %v181_v15 = vsel %vm3189_vm4, %v176_v54, %v3355_v11  ;;  %v3438_v11 = vld [vmem:[%s4154_s0 + $0x54] sm:$0xf]  ;;  %v2995_v35 = vld [vmem:[%s4153_s1 + $0x120] ss:$16 sps:$4 sm:$0xff]  }
  0x24   :  { %834 = vmatpush1.bf16.msra.mxu0 %v2984_v3  ;;  %947 = vmatpush1.bf16.msra.mxu1 %v2987_v27  ;;  %v230_v3 = vshrl.u32 %v3394_v40, 16  ;;  %v191_v16 = vsel %vm3189_vm4, %v186_v56, %v190_v48  ;;  %v214_v19 = vrot.slane %v212_v50, 5  ;;  %v2615_v23 = vcombine.low %v68_v59, %v68_v59 }
  0x25   :  { %2617 = vmatprep.subr.msk.bf16.mxu0 %vm422_vm2, %v2614_v4  ;;  %v200_v25 = vrot.slane %v199_v61, 4  ;;  %v3431_v26 = vrot.slane %v226_v63, 5  ;;  %2626 = vmatprep.subr.msk.bf16.mxu1 %vm422_vm2, %v2616_v10  ;;  %v210_v30 = vrot.slane %v209_v0, 4  ;;  %v223_v31 = vor.u32 %v222_v2, %v219_v62 }
  0x26   :  { %2574 = vmatmul.mubr.msk.bf16.gmra.mrb[8].mxu0 %vm397_vm3, %v2545_v28  ;;  %2583 = vmatmul.mubr.msk.bf16.gmra.mrb[8].mxu1 %vm397_vm3, %v2545_v28  ;;  %v232_v27 = vrot.slane %v230_v3, 4  ;;  %v816_v28 = vsel %vm422_vm2, %v2613_v9, 0  ;;  %v822_v32 = vsel %vm422_vm2, %v2615_v23, 0  ;;  %v1066_v37 = vrot.slane %v3173_v21, 5  ;;  %v3007_v9 = vld [vmem:[%s4153_s1 + $0x14c] ss:$16 sps:$4 sm:$0xff]  }
  0x27   :  { %497 = vmatprep.mubr.bf16.mxu0 %v3066_v1  ;;  %610 = vmatprep.mubr.bf16.mxu1 %v3066_v1  ;;  %v1069_v39 = vrot.slane %v3178_v24, 5  ;;  %v2547_v41 = vcombine.low %v181_v15, %v191_v16  ;;  %v241_v47 = vshrl.u32 %v3438_v11, 16  ;;  %v244_v48 = vshll.u32 %v3438_v11, 16 }
  0x28   :  { %836 = vmatpush1.bf16.msra.mxu0 %v816_v28  ;;  %949 = vmatpush1.bf16.msra.mxu1 %v822_v32  ;;  %v233_v21 = vor.u32 %v232_v27, %v3431_v26  ;;  %v236_v24 = vshll.u32 %v3428_v22, 16  ;;  %v3461_v49 = vcombine.low %v3269_v13, %v3278_v17  ;;  %v3465_v53 = vcombine.low %v3318_v51, %v3328_v57 }
  0x29   :  { %1289 = vmatprep.subr.bf16.mxu0 %v2997_v14  ;;  %v205_v54 = vsel %vm3189_vm4, %v200_v25, %v3388_v38  ;;  %v215_v56 = vsel %vm3189_vm4, %v210_v30, %v214_v19  ;;  %v3472_v58 = vrot.slane %v223_v31, 4  ;;  %1402 = vmatprep.subr.bf16.mxu1 %v3000_v36  ;;  %v3476_v50 = vcombine.low %v3360_v12, %v3365_v18 }
  0x2a   :  { %v250_v59 = vshll.u32 %v3451_v43, 16  ;;  %v3481_v61 = vcombine.low %v3381_v33, %v3394_v40  ;;  %v3485_v62 = vcombine.low %v3438_v11, %v3451_v43  ;;  %v3487_v38 = vrot.slane %v241_v47, 4 }
  0x2b   :  { %v3489_v63 = vrot.slane %v244_v48, 5  ;;  %vm1062_vm6 = vcmask 1046532   ;;  %v2635_v0 = vrot.slane %v3168_v20, 9  ;;  %v234_v2 = vrot.slane %v233_v21, 4 }
  0x2c   :  { %v238_v3 = vrot.slane %v236_v24, 5  ;;  %v254_v4 = vshrl.u32 %v3451_v43, 16  ;;  %vm3493_vm7 = vmor %vm1061_vm5, %vm1062_vm6  ;;  %v2636_v10 = vrot.slane %v3208_v44, 9  ;;  %v2548_v14 = vcombine.low %v205_v54, %v215_v56 }
  0x2d   :  { %v229_v15 = vsel %vm3189_vm4, %v3472_v58, %v3431_v26  ;;  %v1067_v20 = vsel %vm3493_vm7, %v2635_v0, %v1066_v37  ;;  %v247_v19 = vor.u32 %v3489_v63, %v3487_v38  ;;  %v3510_v44 = vrot.slane %v250_v59, 5 }
  0x2e   :  { %2575 = vmatmul.mubr.msk.bf16.gmra.mrb[12].mxu0 %vm397_vm3, %v2546_v8  ;;  %2584 = vmatmul.mubr.msk.bf16.gmra.mrb[12].mxu1 %vm397_vm3, %v2546_v8  ;;  %v1068_v8 = vrot.slane %v1066_v37, 4  ;;  %v1073_v25 = vrot.slane %v3213_v45, 5  ;;  %v239_v26 = vsel %vm3189_vm4, %v234_v2, %v238_v3  ;;  %v256_v27 = vrot.slane %v254_v4, 4 }
  0x2f   :  { %507 = vmatprep.mubr.bf16.mxu0 %v3066_v1  ;;  %620 = vmatprep.mubr.bf16.mxu1 %v3066_v1  ;;  %v1076_v28 = vrot.slane %v3218_v46, 5  ;;  %v2637_v30 = vrot.slane %v3248_v5, 9  ;;  %v1080_v36 = vrot.slane %v3253_v6, 5  ;;  %v1083_v45 = vrot.slane %v3258_v7, 5  ;;  %v50_v6 = vld [vmem:[%s4154_s0 + $0x5c] sm:$0x1] }
  0x30   :  { %v1070_v16 = vsel %vm3493_vm7, %v1068_v8, %v1069_v39  ;;  %v1074_v31 = vsel %vm3493_vm7, %v2636_v10, %v1073_v25  ;;  %v1075_v32 = vrot.slane %v1073_v25, 4  ;;  %v2638_v37 = vrot.slane %v3269_v13, 9 }
  0x31   :  { %v3512_v23 = vcombine.low %v1067_v20, %v1070_v16  ;;  %v1087_v39 = vrot.slane %v3278_v17, 5  ;;  %v2639_v47 = vrot.slane %v3318_v51, 9  ;;  %v1081_v5 = vsel %vm3493_vm7, %v2637_v30, %v1080_v36 }
  0x32   :  { %v1077_v46 = vsel %vm3493_vm7, %v1075_v32, %v1076_v28  ;;  %v1082_v48 = vrot.slane %v1080_v36, 4  ;;  %v1094_v21 = vrot.slane %v3328_v57, 5  ;;  %v2640_v57 = vrot.slane %v3360_v12, 9 }
  0x33   :  { %v3537_v7 = vcombine.low %v1074_v31, %v1077_v46  ;;  %v1088_v13 = vsel %vm3493_vm7, %v2638_v37, %v1087_v39  ;;  %v1089_v17 = vrot.slane %v1087_v39, 4  ;;  %v1101_v59 = vrot.slane %v3365_v18, 5  ;;  %v3002_v39 = vld [vmem:[%s4153_s1 + $0x140] ss:$16 sps:$4 sm:$0xff]  }
  0x34   :  { %v1084_v51 = vsel %vm3493_vm7, %v1082_v48, %v1083_v45  ;;  %v1095_v24 = vsel %vm3493_vm7, %v2639_v47, %v1094_v21  ;;  %v1096_v54 = vrot.slane %v1094_v21, 4  ;;  %v1104_v38 = vrot.slane %v3386_v34, 5  ;;  %v3012_v47 = vld [vmem:[%s4153_s1 + $0x164] ss:$16 sps:$4 sm:$0xff]   ;;  %v3010_v46 = vld [vmem:[%s4153_s1 + $0x160] ss:$16 sps:$4 sm:$0xff]  }
  0x35   :  { %v3547_v56 = vcombine.low %v1081_v5, %v1084_v51  ;;  %v260_v63 = vshll.u32 %v50_v6, 16  ;;  %v1102_v18 = vsel %vm3493_vm7, %v2640_v57, %v1101_v59  ;;  %v1103_v34 = vrot.slane %v1101_v59, 4  ;;  %v3013_v5 = vld [vmem:[%s4153_s1 + $0x168] ss:$16 sps:$4 sm:$0xff]   ;;  %v3019_v48 = vld [vmem:[%s4153_s1 + $0x184] ss:$16 sps:$4 sm:$0xff]  }
  0x36   :  { %2576 = vmatmul.mubr.msk.bf16.gmra.mrb[16].mxu0 %vm397_vm3, %v2547_v41  ;;  %2585 = vmatmul.mubr.msk.bf16.gmra.mrb[16].mxu1 %vm397_vm3, %v2547_v41  ;;  %v1090_v41 = vrot.slane %v3293_v29, 5  ;;  %v1097_v29 = vrot.slane %v3334_v60, 5  ;;  %v257_v60 = vor.u32 %v256_v27, %v3510_v44  ;;  %v2641_v3 = vrot.slane %v3381_v33, 9  ;;  %v3023_v21 = vld [vmem:[%s4153_s1 + $0x18c] ss:$16 sps:$4 sm:$0xff]   ;;  %v3040_v59 = vld [vmem:[%s4155_s3 + $0xd0] sm:$0xff]  }
  0x37   :  { %517 = vmatprep.mubr.bf16.mxu0 %v3066_v1  ;;  %630 = vmatprep.mubr.bf16.mxu1 %v3066_v1  ;;  %v1108_v4 = vrot.slane %v3394_v40, 5  ;;  %v1111_v8 = vrot.slane %v3428_v22, 5  ;;  %v2549_v10 = vcombine.low %v229_v15, %v239_v26  ;;  %v248_v20 = vrot.slane %v247_v19, 4 }
  0x38   :  { %v1091_v58 = vsel %vm3493_vm7, %v1089_v17, %v1090_v41  ;;  %v1098_v12 = vsel %vm3493_vm7, %v1096_v54, %v1097_v29  ;;  %v258_v28 = vrot.slane %v257_v60, 4  ;;  %v262_v30 = vrot.slane %v260_v63, 5  ;;  %v3005_v41 = vld [vmem:[%s4153_s1 + $0x148] ss:$16 sps:$4 sm:$0xff]   ;;  %v3017_v17 = vld [vmem:[%s4153_s1 + $0x180] ss:$16 sps:$4 sm:$0xff]  }
  0x39   :  { %v3556_v0 = vcombine.low %v1088_v13, %v1091_v58  ;;  %v3562_v2 = vcombine.low %v1095_v24, %v1098_v12  ;;  %v1109_v25 = vsel %vm3493_vm7, %v2641_v3, %v1108_v4  ;;  %v1110_v27 = vrot.slane %v1108_v4, 4  ;;  %v2660_v13 = vld [vmem:[%s4153_s1 + $0x1a8] sm:$0xff]  ;;  %v3042_v60 = vld [vmem:[%s4155_s3 + $0x58] sm:$0xff]   ;;  %v3049_v3 = vld [vmem:[%s4155_s3 + $0xa0] sm:$0xff]  }
  0x3a   :  { %v253_v40 = vsel %vm3189_vm4, %v248_v20, %v3510_v44  ;;  %v263_v22 = vsel %vm3189_vm4, %v258_v28, %v262_v30  ;;  %v2642_v15 = vrot.slane %v3438_v11, 9  ;;  %v1115_v19 = vrot.slane %v3451_v43, 5  ;;  %v2998_v11 = vld [vmem:[%s4153_s1 + $0x128] ss:$16 sps:$4 sm:$0xff]   ;;  %v3004_v43 = vld [vmem:[%s4153_s1 + $0x144] ss:$16 sps:$4 sm:$0xff]  }
  0x3b   :  { %v1112_v33 = vsel %vm3493_vm7, %v1110_v27, %v1111_v8  ;;  %v1118_v26 = vrot.slane %v50_v6, 5  ;;  %v2550_v45 = vcombine.low %v253_v40, %v263_v22  ;;  %v2659_v6 = vld [vmem:[%s4153_s1 + $0x1a0] sm:$0xff]  ;;  %v3021_v29 = vld [vmem:[%s4153_s1 + $0x188] ss:$16 sps:$4 sm:$0xff]   ;;  %v2688_v24 = vcombine.high %v2660_v13, %v2660_v13  ;;  %v3054_v20 = vld [vmem:[%s4155_s3 + $0x70] sm:$0xff]  }
  0x3c   :  { %v3577_v31 = vcombine.low %v1109_v25, %v1112_v33  ;;  %v1116_v32 = vsel %vm3493_vm7, %v2642_v15, %v1115_v19  ;;  %v1117_v36 = vrot.slane %v1115_v19, 4  ;;  %v2686_v51 = vcombine.high %v2659_v6, %v2659_v6  ;;  %v3043_v63 = vld [vmem:[%s4155_s3 + $0x18] sm:$0xff]   ;;  %v3050_v4 = vld [vmem:[%s4155_s3 + $0x68] sm:$0xff]   ;;  %v3055_v25 = vld [vmem:[%s4155_s3 + $0x30] sm:$0xff]  }
  0x3d   :  { %v2687_v54 = vcombine.low %v2660_v13, %v2660_v13  ;;  %v3045_v12 = vld [vmem:[%s4155_s3 + $0x98] sm:$0xff]   ;;  %v3052_v8 = vld [vmem:[%s4155_s3 + $0xe8] sm:$0xff]   ;;  %v3057_v27 = vld [vmem:[%s4155_s3 + $0xb0] sm:$0xff]   ;;  %v1581_v28 = vlaneseq  ;;  %vm2120_vm8 = vcmask 1041409   ;;  %vm2122_vm9 = vcmask 1042434  }
  0x3e   :  { %2577 = vmatmul.mubr.msk.bf16.gmra.mrb[20].mxu0 %vm397_vm3, %v2548_v14  ;;  %2586 = vmatmul.mubr.msk.bf16.gmra.mrb[20].mxu1 %vm397_vm3, %v2548_v14  ;;  %v1105_v14 = vsel %vm3493_vm7, %v1103_v34, %v1104_v38  ;;  %v1119_v44 = vsel %vm3493_vm7, %v1117_v36, %v1118_v26  ;;  %v3041_v38 = vld [vmem:[%s4155_s3 + $0x90] sm:$0xff]   ;;  %v3047_v34 = vld [vmem:[%s4155_s3 + $0x20] sm:$0xff]   ;;  %v3058_v30 = vld [vmem:[%s4155_s3 + $0x78] sm:$0xff]   ;;  %vm2124_vm10 = vcmask 1043459   ;;  %vm2126_vm11 = vcmask 1044484  }
  0x3f   :  { %527 = vmatprep.mubr.bf16.mxu0 %v3066_v1  ;;  %640 = vmatprep.mubr.bf16.mxu1 %v3066_v1  ;;  %v3571_v16 = vcombine.low %v1102_v18, %v1105_v14  ;;  %v3594_v37 = vcombine.low %v1116_v32, %v1119_v44  ;;  %v1284_v58 = vsel %vm422_vm2, %v2687_v54, 0  ;;  %v3048_v18 = vld [vmem:[%s4155_s3 + $0xe0] sm:$0xff]   ;;  %v3053_v14 = vld [vmem:[%s4155_s3 + $0xa8] sm:$0xff]   ;;  %v3059_v33 = vld [vmem:[%s4155_s3 + $0x38] sm:$0xff]   ;;  %v1582_v22 = vshrl.u32 %v1581_v28, 7 }
  0x40   :  { %v3061_v40 = vld [vmem:[%s4155_s3 + $0xb8] sm:$0xff]   ;;  %v1579_v15 = vld [vmem:[%s4156_s2] sm:$0xf]  ;;  %vm2128_vm12 = vcmask 1045509   ;;  %vm2130_vm13 = vcmask 1046534   ;;  %vm2132_vm14 = vcmask 1047559  }
  0x41   :  { %v1583_v19 = vsub.s32 0, %v1582_v22  ;;  %v1591_v26 = vsub.s32 2, %v1582_v22  ;;  %v1587_v32 = vsub.s32 1, %v1582_v22  ;;  %v1595_v36 = vsub.s32 3, %v1582_v22 }
  0x42   :  { %vm3068_vm15 = vmmov 0   ;;  %vm2476_vm0 = vcmask 523264  }
  0x43   :  { %v3846_v44 = vrot.slane %v1579_v15, %v1583_v19 }
  0x46   :  { %2578 = vmatmul.mubr.msk.bf16.gmra.mrb[24].mxu0 %vm397_vm3, %v2549_v10  ;;  %2587 = vmatmul.mubr.msk.bf16.gmra.mrb[24].mxu1 %vm397_vm3, %v2549_v10  ;;  %v3051_v10 = vld [vmem:[%s4155_s3 + $0x28] sm:$0xff]  }
  0x47   :  { %537 = vmatprep.mubr.bf16.mxu0 %v3066_v1  ;;  %650 = vmatprep.mubr.bf16.mxu1 %v3066_v1 }
  0x4e   :  { %2579 = vmatmul.mubr.msk.bf16.gmra.mrb[28].mxu0 %vm397_vm3, %v2550_v45  ;;  %2588 = vmatmul.mubr.msk.bf16.gmra.mrb[28].mxu1 %vm397_vm3, %v2550_v45  ;;  %v3067_v45 = vmov 0.0  }
  0x4f   :  { %859 = vmatprep.mubr.bf16.mxu0 %v3066_v1  ;;  %972 = vmatprep.mubr.bf16.mxu1 %v3066_v1 }
  0x56   :  { %2618 = vmatmul.mubr.msk.bf16.vlgmr.msra.gmra.mrb[0].mxu0 %vm397_vm3, %v3201_v42  ;;  %2627 = vmatmul.mubr.msk.bf16.vlgmr.msra.gmra.mrb[0].mxu1 %vm397_vm3, %v3201_v42  ;;  %v3015_v42 = vld [vmem:[%s4153_s1 + $0x16c] ss:$16 sps:$4 sm:$0xff]  }
  0x57   :  { %1290 = vmatpush1.bf16.msra.mxu0 %v2995_v35  ;;  %1403 = vmatpush1.bf16.msra.mxu1 %v2998_v11  ;;  %v3850_v35 = vrot.slane %v1579_v15, %v1587_v32  ;;  %v3852_v11 = vrot.slane %v1579_v15, %v1595_v36 }
  0x58   :  { %869 = vmatprep.mubr.bf16.mxu0 %v3066_v1  ;;  %982 = vmatprep.mubr.bf16.mxu1 %v3066_v1 }
  0x59   :  { %1291 = vmatprep.subr.bf16.mxu0 %v3004_v43  ;;  %1404 = vmatprep.subr.bf16.mxu1 %v3007_v9 }
  0x5b   :  { %1292 = vmatpush1.bf16.msra.mxu0 %v3002_v39  ;;  %1405 = vmatpush1.bf16.msra.mxu1 %v3005_v41 }
  0x5c   :  { %1293 = vmatprep.subr.bf16.mxu0 %v3012_v47  ;;  %1406 = vmatprep.subr.bf16.mxu1 %v3015_v42 }
  0x5e   :  { %2619 = vmatmul.mubr.msk.bf16.gmra.mrb[4].mxu0 %vm397_vm3, %v3230_v55  ;;  %2628 = vmatmul.mubr.msk.bf16.gmra.mrb[4].mxu1 %vm397_vm3, %v3230_v55  ;;  %v2685_v55 = vcombine.low %v2659_v6, %v2659_v6 }
  0x5f   :  { %879 = vmatprep.mubr.bf16.mxu0 %v3066_v1  ;;  %992 = vmatprep.mubr.bf16.mxu1 %v3066_v1 }
  0x60   :  { %1294 = vmatpush1.bf16.msra.mxu0 %v3010_v46  ;;  %1407 = vmatpush1.bf16.msra.mxu1 %v3013_v5  ;;  %v1278_v57 = vsel %vm422_vm2, %v2685_v55, 0 }
  0x61   :  { %1295 = vmatprep.subr.bf16.mxu0 %v3019_v48  ;;  %1408 = vmatprep.subr.bf16.mxu1 %v3023_v21 }
  0x64   :  { %1296 = vmatpush1.bf16.msra.mxu0 %v3017_v17  ;;  %1409 = vmatpush1.bf16.msra.mxu1 %v3021_v29 }
  0x65   :  { %2689 = vmatprep.subr.msk.bf16.mxu0 %vm422_vm2, %v2686_v51  ;;  %2698 = vmatprep.subr.msk.bf16.mxu1 %vm422_vm2, %v2688_v24 }
  0x66   :  { %2620 = vmatmul.mubr.msk.bf16.gmra.mrb[8].mxu0 %vm397_vm3, %v3322_v52  ;;  %2629 = vmatmul.mubr.msk.bf16.gmra.mrb[8].mxu1 %vm397_vm3, %v3322_v52  ;;  %v3030_v52 = vld [vmem:[%s4155_s3 + $0x40] sm:$0xff]  }
  0x67   :  { %889 = vmatprep.mubr.bf16.mxu0 %v3066_v1  ;;  %1002 = vmatprep.mubr.bf16.mxu1 %v3066_v1 }
  0x68   :  { %1298 = vmatpush1.bf16.msra.mxu0 %v1278_v57  ;;  %1411 = vmatpush1.bf16.msra.mxu1 %v1284_v58 }
  0x69   :  { %2746 = vmatprep.subr.bf16.mxu0 %v3030_v52 }
  0x6e   :  { %2621 = vmatmul.mubr.msk.bf16.gmra.mrb[12].mxu0 %vm397_vm3, %v3461_v49  ;;  %2630 = vmatmul.mubr.msk.bf16.gmra.mrb[12].mxu1 %vm397_vm3, %v3461_v49  ;;  %v3031_v49 = vld [vmem:[%s4155_s3] sm:$0xff]  }
  0x6f   :  { %899 = vmatprep.mubr.bf16.mxu0 %v3066_v1  ;;  %1012 = vmatprep.mubr.bf16.mxu1 %v3066_v1 }
  0x76   :  { %2622 = vmatmul.mubr.msk.bf16.gmra.mrb[16].mxu0 %vm397_vm3, %v3465_v53  ;;  %2631 = vmatmul.mubr.msk.bf16.gmra.mrb[16].mxu1 %vm397_vm3, %v3465_v53  ;;  %v3032_v53 = vld [vmem:[%s4155_s3 + $0xc0] sm:$0xff]  }
  0x77   :  { %909 = vmatprep.mubr.bf16.mxu0 %v3066_v1  ;;  %1022 = vmatprep.mubr.bf16.mxu1 %v3066_v1 }
  0x78   :  { %2768 = vmatprep.subr.bf16.mxu1 %v3032_v53 }
  0x7e   :  { %2623 = vmatmul.mubr.msk.bf16.gmra.mrb[20].mxu0 %vm397_vm3, %v3476_v50  ;;  %2632 = vmatmul.mubr.msk.bf16.gmra.mrb[20].mxu1 %vm397_vm3, %v3476_v50  ;;  %v3034_v50 = vld [vmem:[%s4155_s3 + $0x48] sm:$0xff]  }
  0x7f   :  { %919 = vmatprep.mubr.bf16.mxu0 %v3066_v1  ;;  %1032 = vmatprep.mubr.bf16.mxu1 %v3066_v1 }
  0x86   :  { %2624 = vmatmul.mubr.msk.bf16.gmra.mrb[24].mxu0 %vm397_vm3, %v3481_v61  ;;  %2633 = vmatmul.mubr.msk.bf16.gmra.mrb[24].mxu1 %vm397_vm3, %v3481_v61  ;;  %v3035_v61 = vld [vmem:[%s4155_s3 + $0x8] sm:$0xff]  }
  0x87   :  { %929 = vmatprep.mubr.bf16.mxu0 %v3066_v1  ;;  %1042 = vmatprep.mubr.bf16.mxu1 %v3066_v1 }
  0x8e   :  { %2625 = vmatmul.mubr.msk.bf16.gmra.mrb[28].mxu0 %vm397_vm3, %v3485_v62  ;;  %2634 = vmatmul.mubr.msk.bf16.gmra.mrb[28].mxu1 %vm397_vm3, %v3485_v62  ;;  %v3036_v62 = vld [vmem:[%s4155_s3 + $0xc8] sm:$0xff]  }
  0x8f   :  { %1321 = vmatprep.mubr.bf16.mxu0 %v3066_v1  ;;  %1434 = vmatprep.mubr.bf16.mxu1 %v3066_v1 }
  0x96   :  { %2690 = vmatmul.mubr.msk.bf16.vlgmr.msra.gmra.mrb[0].mxu0 %vm397_vm3, %v3512_v23  ;;  %2699 = vmatmul.mubr.msk.bf16.vlgmr.msra.gmra.mrb[0].mxu1 %vm397_vm3, %v3512_v23  ;;  %v3037_v23 = vld [vmem:[%s4155_s3 + $0x88] sm:$0xff]  }
  0x97   :  { %1331 = vmatprep.mubr.bf16.mxu0 %v3066_v1  ;;  %1444 = vmatprep.mubr.bf16.mxu1 %v3066_v1 }
  0x98   :  { %2747 = vmatpush3.bf16.msra.mxu0 %v3031_v49 }
  0x99   :  { %2748 = vmatprep.subr.bf16.mxu0 %v3034_v50 }
  0x9c   :  { %2749 = vmatpush3.bf16.msra.mxu0 %v3035_v61 }
  0x9e   :  { %2691 = vmatmul.mubr.msk.bf16.gmra.mrb[4].mxu0 %vm397_vm3, %v3537_v7  ;;  %2700 = vmatmul.mubr.msk.bf16.gmra.mrb[4].mxu1 %vm397_vm3, %v3537_v7  ;;  %v3038_v7 = vld [vmem:[%s4155_s3 + $0x50] sm:$0xff]  }
  0x9f   :  { %1341 = vmatprep.mubr.bf16.mxu0 %v3066_v1  ;;  %1454 = vmatprep.mubr.bf16.mxu1 %v3066_v1 }
  0xa0   :  { %2750 = vmatprep.subr.bf16.mxu0 %v3038_v7 }
  0xa6   :  { %2692 = vmatmul.mubr.msk.bf16.gmra.mrb[8].mxu0 %vm397_vm3, %v3547_v56  ;;  %2701 = vmatmul.mubr.msk.bf16.gmra.mrb[8].mxu1 %vm397_vm3, %v3547_v56  ;;  %v3039_v56 = vld [vmem:[%s4155_s3 + $0x10] sm:$0xff]  }
  0xa7   :  { %1351 = vmatprep.mubr.bf16.mxu0 %v3066_v1  ;;  %1464 = vmatprep.mubr.bf16.mxu1 %v3066_v1 }
  0xa8   :  { %2751 = vmatpush3.bf16.msra.mxu0 %v3039_v56 }
  0xa9   :  { %2752 = vmatprep.subr.bf16.mxu0 %v3042_v60 }
  0xac   :  { %2753 = vmatpush3.bf16.msra.mxu0 %v3043_v63 }
  0xae   :  { %2693 = vmatmul.mubr.msk.bf16.gmra.mrb[12].mxu0 %vm397_vm3, %v3556_v0  ;;  %2702 = vmatmul.mubr.msk.bf16.gmra.mrb[12].mxu1 %vm397_vm3, %v3556_v0  ;;  %v3044_v0 = vld [vmem:[%s4155_s3 + $0xd8] sm:$0xff]  }
  0xaf   :  { %1361 = vmatprep.mubr.bf16.mxu0 %v3066_v1  ;;  %1474 = vmatprep.mubr.bf16.mxu1 %v3066_v1 }
  0xb6   :  { %2694 = vmatmul.mubr.msk.bf16.gmra.mrb[16].mxu0 %vm397_vm3, %v3562_v2  ;;  %2703 = vmatmul.mubr.msk.bf16.gmra.mrb[16].mxu1 %vm397_vm3, %v3562_v2  ;;  %v3046_v2 = vld [vmem:[%s4155_s3 + $0x60] sm:$0xff]  }
  0xb7   :  { %1371 = vmatprep.mubr.bf16.mxu0 %v3066_v1  ;;  %1484 = vmatprep.mubr.bf16.mxu1 %v3066_v1 }
  0xb8   :  { %2754 = vmatprep.subr.bf16.mxu0 %v3046_v2 }
  0xb9   :  { %2755 = vmatpush3.bf16.msra.mxu0 %v3047_v34 }
  0xba   :  { %2756 = vmatprep.subr.bf16.mxu0 %v3050_v4 }
  0xbd   :  { %2757 = vmatpush3.bf16.msra.mxu0 %v3051_v10 }
  0xbe   :  { %2695 = vmatmul.mubr.msk.bf16.gmra.mrb[20].mxu0 %vm397_vm3, %v3571_v16  ;;  %2704 = vmatmul.mubr.msk.bf16.gmra.mrb[20].mxu1 %vm397_vm3, %v3571_v16  ;;  %v3056_v16 = vld [vmem:[%s4155_s3 + $0xf0] sm:$0xff]  }
  0xbf   :  { %1381 = vmatprep.mubr.bf16.mxu0 %v3066_v1  ;;  %1494 = vmatprep.mubr.bf16.mxu1 %v3066_v1 }
  0xc0   :  { %2758 = vmatprep.subr.bf16.mxu0 %v3054_v20 }
  0xc1   :  { %2759 = vmatpush3.bf16.msra.mxu0 %v3055_v25 }
  0xc2   :  { %2760 = vmatprep.subr.bf16.mxu0 %v3058_v30 }
  0xc5   :  { %2761 = vmatpush3.bf16.msra.mxu0 %v3059_v33 }
  0xc6   :  { %2696 = vmatmul.mubr.msk.bf16.gmra.mrb[24].mxu0 %vm397_vm3, %v3577_v31  ;;  %2705 = vmatmul.mubr.msk.bf16.gmra.mrb[24].mxu1 %vm397_vm3, %v3577_v31  ;;  %v3060_v31 = vld [vmem:[%s4155_s3 + $0xf8] sm:$0xff]  }
  0xc7   :  { %1391 = vmatprep.mubr.bf16.mxu0 %v3066_v1  ;;  %1504 = vmatprep.mubr.bf16.mxu1 %v3066_v1  ;;  %v3033_v1 = vld [vmem:[%s4155_s3 + $0x80] sm:$0xff]  }
  0xc8   :  { %2769 = vmatpush3.bf16.msra.mxu1 %v3033_v1  ;;  %2795 = vmatprep.subr.bf16.mxu0 %v3067_v45 }
  0xc9   :  { %2770 = vmatprep.subr.bf16.mxu1 %v3036_v62 }
  0xcc   :  { %2771 = vmatpush3.bf16.msra.mxu1 %v3037_v23 }
  0xcd   :  { %2772 = vmatprep.subr.bf16.mxu1 %v3040_v59 }
  0xce   :  { %2697 = vmatmul.mubr.msk.bf16.gmra.mrb[28].mxu0 %vm397_vm3, %v3594_v37  ;;  %2706 = vmatmul.mubr.msk.bf16.gmra.mrb[28].mxu1 %vm397_vm3, %v3594_v37  ;;  %v3848_v37 = vrot.slane %v1579_v15, %v1591_v26 }
  0xd0   :  { %2773 = vmatpush3.bf16.msra.mxu1 %v3041_v38 }
  0xd1   :  { %2774 = vmatprep.subr.bf16.mxu1 %v3044_v0 }
  0xd4   :  { %2775 = vmatpush3.bf16.msra.mxu1 %v3045_v12 }
  0xd5   :  { %2776 = vmatprep.subr.bf16.mxu1 %v3048_v18 }
  0xd8   :  { %2777 = vmatpush3.bf16.msra.mxu1 %v3049_v3 }
  0xd9   :  { %2778 = vmatprep.subr.bf16.mxu1 %v3052_v8 }
  0xdc   :  { %2779 = vmatpush3.bf16.msra.mxu1 %v3053_v14 }
  0xdd   :  { %2780 = vmatprep.subr.bf16.mxu1 %v3056_v16 }
  0xe0   :  { %2781 = vmatpush3.bf16.msra.mxu1 %v3057_v27 }
  0xe1   :  { %2782 = vmatprep.subr.bf16.mxu1 %v3060_v31 }
  0xe4   :  { %2783 = vmatpush3.bf16.msra.mxu1 %v3061_v40 }
 0x169   :  { %v1323_v43 = vpop.f32.mrb[0].mxu0  ;;  %v1436_v9 = vpop.f32.mrb[0].mxu1 }
 0x16a   :  { %v1601_v39 = vadd.f32 %v3846_v44, %v1323_v43  ;;  %v1603_v41 = vadd.f32 %v3848_v37, %v1436_v9  ;;  %v1325_v47 = vpop.f32.mrb[1].mxu0  ;;  %v1438_v42 = vpop.f32.mrb[1].mxu1 }
 0x16b   :  { %v1602_v46 = vadd.f32 %v3850_v35, %v1325_v47  ;;  %v1604_v5 = vadd.f32 %v3852_v11, %v1438_v42  ;;  %v1327_v48 = vpop.f32.mrb[2].mxu0  ;;  %v1440_v21 = vpop.f32.mrb[2].mxu1 }
 0x16c   :  { %v1605_v6 = vadd.f32 %v3846_v44, %v1327_v48  ;;  %v1607_v13 = vadd.f32 %v3848_v37, %v1440_v21  ;;  %v1329_v17 = vpop.f32.mrb[3].mxu0  ;;  %v1442_v29 = vpop.f32.mrb[3].mxu1  ;;  %v1665_v24 = vmax.f32 %v1601_v39, 0.0  ;;  %v1667_v54 = vmax.f32 %v1603_v41, 0.0 }
 0x16d   :  { %v1606_v51 = vadd.f32 %v3850_v35, %v1329_v17  ;;  %v1608_v55 = vadd.f32 %v3852_v11, %v1442_v29  ;;  %v1666_v52 = vmax.f32 %v1602_v46, 0.0  ;;  %v1668_v49 = vmax.f32 %v1604_v5, 0.0 }
 0x16e   :  { %v1669_v57 = vmax.f32 %v1605_v6, 0.0  ;;  %v1671_v58 = vmax.f32 %v1607_v13, 0.0 }
 0x16f   :  { %v1670_v53 = vmax.f32 %v1606_v51, 0.0  ;;  %v1672_v1 = vmax.f32 %v1608_v55, 0.0 }
 0x170   :  { %v1729_v50 = vadd.f32 %v1669_v57, %v1665_v24  ;;  %v1743_v61 = vadd.f32 %v1671_v58, %v1667_v54 }
 0x171   :  { %v1736_v62 = vadd.f32 %v1670_v53, %v1666_v52  ;;  %v1750_v23 = vadd.f32 %v1672_v1, %v1668_v49  ;;  %v1333_v7 = vpop.f32.mrb[4].mxu0  ;;  %v1446_v56 = vpop.f32.mrb[4].mxu1 }
 0x172   :  { %v1730_v59 = vrot.slane %v1729_v50, 4  ;;  %v1744_v38 = vrot.slane %v1743_v61, 4  ;;  %v1609_v60 = vadd.f32 %v3846_v44, %v1333_v7  ;;  %v1611_v63 = vadd.f32 %v3848_v37, %v1446_v56  ;;  %v1335_v0 = vpop.f32.mrb[5].mxu0  ;;  %v1448_v12 = vpop.f32.mrb[5].mxu1 }
 0x173   :  { %v1737_v2 = vrot.slane %v1736_v62, 4  ;;  %v1751_v18 = vrot.slane %v1750_v23, 4  ;;  %v1610_v34 = vadd.f32 %v3850_v35, %v1335_v0  ;;  %v1612_v3 = vadd.f32 %v3852_v11, %v1448_v12  ;;  %v1337_v4 = vpop.f32.mrb[6].mxu0  ;;  %v1450_v8 = vpop.f32.mrb[6].mxu1 }
 0x174   :  { %v1731_v10 = vadd.f32 %v1730_v59, %v1729_v50  ;;  %v1745_v14 = vadd.f32 %v1744_v38, %v1743_v61  ;;  %v1673_v20 = vmax.f32 %v1609_v60, 0.0  ;;  %v1675_v16 = vmax.f32 %v1611_v63, 0.0  ;;  %v1339_v25 = vpop.f32.mrb[7].mxu0  ;;  %v1452_v27 = vpop.f32.mrb[7].mxu1 }
 0x175   :  { %v1738_v28 = vadd.f32 %v1737_v2, %v1736_v62  ;;  %v1752_v30 = vadd.f32 %v1751_v18, %v1750_v23  ;;  %v1674_v33 = vmax.f32 %v1610_v34, 0.0  ;;  %v1676_v31 = vmax.f32 %v1612_v3, 0.0 }
 0x176   :  { %v1732_v40 = vrot.slane %v1731_v10, 2  ;;  %v1746_v22 = vrot.slane %v1745_v14, 2  ;;  %v1613_v15 = vadd.f32 %v3846_v44, %v1337_v4  ;;  %v1615_v19 = vadd.f32 %v3848_v37, %v1450_v8 }
 0x177   :  { %v1739_v26 = vrot.slane %v1738_v28, 2  ;;  %v1753_v32 = vrot.slane %v1752_v30, 2  ;;  %v1614_v36 = vadd.f32 %v3850_v35, %v1339_v25  ;;  %v1616_v43 = vadd.f32 %v3852_v11, %v1452_v27 }
 0x178   :  { %v1733_v9 = vadd.f32 %v1732_v40, %v1731_v10  ;;  %v1747_v39 = vadd.f32 %v1746_v22, %v1745_v14  ;;  %v1677_v41 = vmax.f32 %v1613_v15, 0.0  ;;  %v1679_v47 = vmax.f32 %v1615_v19, 0.0 }
 0x179   :  { %v1740_v42 = vadd.f32 %v1739_v26, %v1738_v28  ;;  %v1754_v46 = vadd.f32 %v1753_v32, %v1752_v30  ;;  %v1678_v5 = vmax.f32 %v1614_v36, 0.0  ;;  %v1680_v48 = vmax.f32 %v1616_v43, 0.0  ;;  %v1343_v21 = vpop.f32.mrb[8].mxu0  ;;  %v1456_v6 = vpop.f32.mrb[8].mxu1 }
 0x17a   :  { %v1734_v13 = vrot.slane %v1733_v9, 1  ;;  %v1748_v17 = vrot.slane %v1747_v39, 1  ;;  %v1757_v29 = vadd.f32 %v1677_v41, %v1673_v20  ;;  %v1771_v51 = vadd.f32 %v1679_v47, %v1675_v16  ;;  %v1345_v55 = vpop.f32.mrb[9].mxu0  ;;  %v1458_v24 = vpop.f32.mrb[9].mxu1 }
 0x17b   :  { %v1741_v54 = vrot.slane %v1740_v42, 1  ;;  %v1755_v57 = vrot.slane %v1754_v46, 1  ;;  %v1764_v58 = vadd.f32 %v1678_v5, %v1674_v33  ;;  %v1778_v52 = vadd.f32 %v1680_v48, %v1676_v31  ;;  %v1347_v49 = vpop.f32.mrb[10].mxu0  ;;  %v1460_v53 = vpop.f32.mrb[10].mxu1 }
 0x17c   :  { %v1735_v1 = vadd.f32 %v1734_v13, %v1733_v9  ;;  %v1749_v50 = vadd.f32 %v1748_v17, %v1747_v39  ;;  %v1758_v61 = vrot.slane %v1757_v29, 4  ;;  %v1772_v62 = vrot.slane %v1771_v51, 4  ;;  %v1349_v23 = vpop.f32.mrb[11].mxu0  ;;  %v1462_v7 = vpop.f32.mrb[11].mxu1 }
 0x17d   :  { %v1742_v56 = vadd.f32 %v1741_v54, %v1740_v42  ;;  %v1756_v59 = vadd.f32 %v1755_v57, %v1754_v46  ;;  %v1765_v38 = vrot.slane %v1764_v58, 4  ;;  %v1779_v60 = vrot.slane %v1778_v52, 4 }
 0x17e   :  { %v1953_v63 = vpack.c.bf16 %v1735_v1, %v1735_v1  ;;  %v1955_v0 = vpack.c.bf16 %v1749_v50, %v1749_v50  ;;  %v1759_v12 = vadd.f32 %v1758_v61, %v1757_v29  ;;  %v1773_v2 = vadd.f32 %v1772_v62, %v1771_v51 }
 0x17f   :  { %v1954_v18 = vpack.c.bf16 %v1742_v56, %v1742_v56  ;;  %v1956_v34 = vpack.c.bf16 %v1756_v59, %v1756_v59  ;;  %v1766_v3 = vadd.f32 %v1765_v38, %v1764_v58  ;;  %v1780_v4 = vadd.f32 %v1779_v60, %v1778_v52 }
 0x180   :  { %v3870_v8 = vunpack.c.l.b16 %v1953_v63  ;;  %v3872_v10 = vunpack.c.l.b16 %v1955_v0  ;;  %v1760_v14 = vrot.slane %v1759_v12, 2  ;;  %v1774_v20 = vrot.slane %v1773_v2, 2 }
 0x181   :  { %v3874_v16 = vunpack.c.l.b16 %v1954_v18  ;;  %v3876_v25 = vunpack.c.l.b16 %v1956_v34  ;;  %v1767_v27 = vrot.slane %v1766_v3, 2  ;;  %v1781_v28 = vrot.slane %v1780_v4, 2  ;;  %v3878_v30 = vpop.f32.mrb[12].mxu0  ;;  %v3880_v33 = vpop.f32.mrb[12].mxu1 }
 0x182   :  { %v1761_v31 = vadd.f32 %v1760_v14, %v1759_v12  ;;  %v1775_v40 = vadd.f32 %v1774_v20, %v1773_v2  ;;  %v1617_v22 = vadd.f32 %v3846_v44, %v1343_v21  ;;  %v1619_v15 = vadd.f32 %v3848_v37, %v1456_v6  ;;  %v3884_v19 = vpop.f32.mrb[13].mxu0  ;;  %v3886_v26 = vpop.f32.mrb[13].mxu1 }
 0x183   :  { %v1768_v32 = vadd.f32 %v1767_v27, %v1766_v3  ;;  %v1782_v36 = vadd.f32 %v1781_v28, %v1780_v4  ;;  %v1618_v43 = vadd.f32 %v3850_v35, %v1345_v55  ;;  %v1620_v9 = vadd.f32 %v3852_v11, %v1458_v24  ;;  %v3890_v39 = vpop.f32.mrb[14].mxu0  ;;  %v3892_v41 = vpop.f32.mrb[14].mxu1 }
 0x184   :  { %v1762_v47 = vrot.slane %v1761_v31, 1  ;;  %v1776_v42 = vrot.slane %v1775_v40, 1  ;;  %v1681_v46 = vmax.f32 %v1617_v22, 0.0  ;;  %v1683_v5 = vmax.f32 %v1619_v15, 0.0  ;;  %v3894_v48 = vpop.f32.mrb[15].mxu0  ;;  %v3896_v21 = vpop.f32.mrb[15].mxu1 }
 0x185   :  { %v1769_v6 = vrot.slane %v1768_v32, 1  ;;  %v1783_v13 = vrot.slane %v1782_v36, 1  ;;  %v1682_v17 = vmax.f32 %v1618_v43, 0.0  ;;  %v1684_v29 = vmax.f32 %v1620_v9, 0.0 }
 0x186   :  { %v1763_v51 = vadd.f32 %v1762_v47, %v1761_v31  ;;  %v1777_v55 = vadd.f32 %v1776_v42, %v1775_v40  ;;  %v1621_v24 = vadd.f32 %v3846_v44, %v1347_v49  ;;  %v1623_v54 = vadd.f32 %v3848_v37, %v1460_v53 }
 0x187   :  { %v1770_v57 = vadd.f32 %v1769_v6, %v1768_v32  ;;  %v1784_v58 = vadd.f32 %v1783_v13, %v1782_v36  ;;  %v1622_v52 = vadd.f32 %v3850_v35, %v1349_v23  ;;  %v1624_v1 = vadd.f32 %v3852_v11, %v1462_v7 }
 0x188   :  { %v1957_v50 = vpack.c.bf16 %v1763_v51, %v1763_v51  ;;  %v1959_v61 = vpack.c.bf16 %v1777_v55, %v1777_v55  ;;  %v1685_v62 = vmax.f32 %v1621_v24, 0.0  ;;  %v1687_v56 = vmax.f32 %v1623_v54, 0.0 }
 0x189   :  { %v1958_v59 = vpack.c.bf16 %v1770_v57, %v1770_v57  ;;  %v1960_v38 = vpack.c.bf16 %v1784_v58, %v1784_v58  ;;  %v1686_v60 = vmax.f32 %v1622_v52, 0.0  ;;  %v1688_v63 = vmax.f32 %v1624_v1, 0.0  ;;  %v3902_v0 = vpop.f32.mrb[16].mxu0  ;;  %v3904_v12 = vpop.f32.mrb[16].mxu1 }
 0x18a   :  { %v2092_v49 = vunpack.c.l.b16 %v1957_v50  ;;  %v2094_v53 = vunpack.c.l.b16 %v1959_v61  ;;  %v1785_v2 = vadd.f32 %v1685_v62, %v1681_v46  ;;  %v1799_v18 = vadd.f32 %v1687_v56, %v1683_v5  ;;  %v3906_v34 = vpop.f32.mrb[17].mxu0  ;;  %v3908_v23 = vpop.f32.mrb[17].mxu1 }
 0x18b   :  { %v2093_v7 = vunpack.c.l.b16 %v1958_v59  ;;  %v2095_v3 = vunpack.c.l.b16 %v1960_v38  ;;  %v1792_v4 = vadd.f32 %v1686_v60, %v1682_v17  ;;  %v1806_v14 = vadd.f32 %v1688_v63, %v1684_v29  ;;  %v3910_v20 = vpop.f32.mrb[18].mxu0  ;;  %v3912_v27 = vpop.f32.mrb[18].mxu1 }
 0x18c   :  { %v3916_v28 = vsel %vm2120_vm8, %v2092_v49, %v3870_v8  ;;  %v3920_v31 = vsel %vm2120_vm8, %v2094_v53, %v3872_v10  ;;  %v1786_v40 = vrot.slane %v1785_v2, 4  ;;  %v1800_v22 = vrot.slane %v1799_v18, 4  ;;  %v3922_v15 = vpop.f32.mrb[19].mxu0  ;;  %v3924_v32 = vpop.f32.mrb[19].mxu1 }
 0x18d   :  { %v3928_v36 = vsel %vm2120_vm8, %v2093_v7, %v3874_v16  ;;  %v3932_v43 = vsel %vm2120_vm8, %v2095_v3, %v3876_v25  ;;  %v1793_v8 = vrot.slane %v1792_v4, 4  ;;  %v1807_v9 = vrot.slane %v1806_v14, 4 }
 0x18e   :  { %v1787_v47 = vadd.f32 %v1786_v40, %v1785_v2  ;;  %v1801_v42 = vadd.f32 %v1800_v22, %v1799_v18  ;;  %v1625_v10 = vadd.f32 %v3846_v44, %v3878_v30  ;;  %v1627_v46 = vadd.f32 %v3848_v37, %v3880_v33 }
 0x18f   :  { %v1794_v5 = vadd.f32 %v1793_v8, %v1792_v4  ;;  %v1808_v6 = vadd.f32 %v1807_v9, %v1806_v14  ;;  %v1626_v16 = vadd.f32 %v3850_v35, %v3884_v19  ;;  %v1628_v13 = vadd.f32 %v3852_v11, %v3886_v26 }
 0x190   :  { %v1788_v25 = vrot.slane %v1787_v47, 2  ;;  %v1802_v17 = vrot.slane %v1801_v42, 2  ;;  %v1689_v29 = vmax.f32 %v1625_v10, 0.0  ;;  %v1691_v51 = vmax.f32 %v1627_v46, 0.0 }
 0x191   :  { %v1795_v55 = vrot.slane %v1794_v5, 2  ;;  %v1809_v24 = vrot.slane %v1808_v6, 2  ;;  %v1690_v54 = vmax.f32 %v1626_v16, 0.0  ;;  %v1692_v30 = vmax.f32 %v1628_v13, 0.0  ;;  %v3942_v57 = vpop.f32.mrb[20].mxu0  ;;  %v3944_v33 = vpop.f32.mrb[20].mxu1 }
 0x192   :  { %v1789_v58 = vadd.f32 %v1788_v25, %v1787_v47  ;;  %v1803_v52 = vadd.f32 %v1802_v17, %v1801_v42  ;;  %v1629_v19 = vadd.f32 %v3846_v44, %v3890_v39  ;;  %v1631_v26 = vadd.f32 %v3848_v37, %v3892_v41  ;;  %v3950_v1 = vpop.f32.mrb[21].mxu0  ;;  %v3952_v50 = vpop.f32.mrb[21].mxu1 }
 0x193   :  { %v1796_v61 = vadd.f32 %v1795_v55, %v1794_v5  ;;  %v1810_v62 = vadd.f32 %v1809_v24, %v1808_v6  ;;  %v1630_v56 = vadd.f32 %v3850_v35, %v3894_v48  ;;  %v1632_v59 = vadd.f32 %v3852_v11, %v3896_v21  ;;  %v3958_v38 = vpop.f32.mrb[22].mxu0  ;;  %v3960_v60 = vpop.f32.mrb[22].mxu1 }
 0x194   :  { %v1790_v39 = vrot.slane %v1789_v58, 1  ;;  %v1804_v63 = vrot.slane %v1803_v52, 1  ;;  %v1693_v49 = vmax.f32 %v1629_v19, 0.0  ;;  %v1695_v41 = vmax.f32 %v1631_v26, 0.0  ;;  %v3962_v53 = vpop.f32.mrb[23].mxu0  ;;  %v3964_v2 = vpop.f32.mrb[23].mxu1 }
 0x195   :  { %v1797_v18 = vrot.slane %v1796_v61, 1  ;;  %v1811_v7 = vrot.slane %v1810_v62, 1  ;;  %v1694_v3 = vmax.f32 %v1630_v56, 0.0  ;;  %v1696_v4 = vmax.f32 %v1632_v59, 0.0 }
 0x196   :  { %v1791_v48 = vadd.f32 %v1790_v39, %v1789_v58  ;;  %v1805_v14 = vadd.f32 %v1804_v63, %v1803_v52  ;;  %v1813_v40 = vadd.f32 %v1693_v49, %v1689_v29  ;;  %v1827_v21 = vadd.f32 %v1695_v41, %v1691_v51 }
 0x197   :  { %v1798_v22 = vadd.f32 %v1797_v18, %v1796_v61  ;;  %v1812_v8 = vadd.f32 %v1811_v7, %v1810_v62  ;;  %v1820_v9 = vadd.f32 %v1694_v3, %v1690_v54  ;;  %v1834_v47 = vadd.f32 %v1696_v4, %v1692_v30 }
 0x198   :  { %v1961_v42 = vpack.c.bf16 %v1791_v48, %v1791_v48  ;;  %v1963_v10 = vpack.c.bf16 %v1805_v14, %v1805_v14  ;;  %v1814_v46 = vrot.slane %v1813_v40, 4  ;;  %v1828_v5 = vrot.slane %v1827_v21, 4 }
 0x199   :  { %v1962_v6 = vpack.c.bf16 %v1798_v22, %v1798_v22  ;;  %v1964_v16 = vpack.c.bf16 %v1812_v8, %v1812_v8  ;;  %v1821_v13 = vrot.slane %v1820_v9, 4  ;;  %v1835_v25 = vrot.slane %v1834_v47, 4  ;;  %v3966_v17 = vpop.f32.mrb[24].mxu0  ;;  %v3968_v55 = vpop.f32.mrb[24].mxu1 }
 0x19a   :  { %v2096_v24 = vunpack.c.l.b16 %v1961_v42  ;;  %v2098_v58 = vunpack.c.l.b16 %v1963_v10  ;;  %v1815_v29 = vadd.f32 %v1814_v46, %v1813_v40  ;;  %v1829_v51 = vadd.f32 %v1828_v5, %v1827_v21  ;;  %v3970_v52 = vpop.f32.mrb[25].mxu0  ;;  %v3972_v54 = vpop.f32.mrb[25].mxu1 }
 0x19b   :  { %v2097_v30 = vunpack.c.l.b16 %v1962_v6  ;;  %v2099_v19 = vunpack.c.l.b16 %v1964_v16  ;;  %v1822_v26 = vadd.f32 %v1821_v13, %v1820_v9  ;;  %v1836_v61 = vadd.f32 %v1835_v25, %v1834_v47  ;;  %v3974_v62 = vpop.f32.mrb[26].mxu0  ;;  %v3976_v56 = vpop.f32.mrb[26].mxu1 }
 0x19c   :  { %v2123_v59 = vsel %vm2122_vm9, %v2096_v24, %v3916_v28  ;;  %v2142_v39 = vsel %vm2122_vm9, %v2098_v58, %v3920_v31  ;;  %v1816_v63 = vrot.slane %v1815_v29, 2  ;;  %v1830_v49 = vrot.slane %v1829_v51, 2  ;;  %v3982_v41 = vpop.f32.mrb[27].mxu0  ;;  %v3984_v18 = vpop.f32.mrb[27].mxu1 }
 0x19d   :  { %v3988_v7 = vsel %vm2122_vm9, %v2097_v30, %v3928_v36  ;;  %v3992_v3 = vsel %vm2122_vm9, %v2099_v19, %v3932_v43  ;;  %v1823_v4 = vrot.slane %v1822_v26, 2  ;;  %v1837_v28 = vrot.slane %v1836_v61, 2 }
 0x19e   :  { %v1817_v48 = vadd.f32 %v1816_v63, %v1815_v29  ;;  %v1831_v14 = vadd.f32 %v1830_v49, %v1829_v51  ;;  %v1633_v31 = vadd.f32 %v3846_v44, %v3902_v0  ;;  %v1635_v40 = vadd.f32 %v3848_v37, %v3904_v12 }
 0x19f   :  { %v1824_v21 = vadd.f32 %v1823_v4, %v1822_v26  ;;  %v1838_v22 = vadd.f32 %v1837_v28, %v1836_v61  ;;  %v1634_v36 = vadd.f32 %v3850_v35, %v3906_v34  ;;  %v1636_v43 = vadd.f32 %v3852_v11, %v3908_v23 }
 0x1a0   :  { %v1818_v8 = vrot.slane %v1817_v48, 1  ;;  %v1832_v9 = vrot.slane %v1831_v14, 1  ;;  %v1697_v47 = vmax.f32 %v1633_v31, 0.0  ;;  %v1699_v42 = vmax.f32 %v1635_v40, 0.0 }
 0x1a1   :  { %v1825_v10 = vrot.slane %v1824_v21, 1  ;;  %v1839_v46 = vrot.slane %v1838_v22, 1  ;;  %v1698_v5 = vmax.f32 %v1634_v36, 0.0  ;;  %v1700_v6 = vmax.f32 %v1636_v43, 0.0  ;;  %v4002_v0 = vpop.f32.mrb[28].mxu0  ;;  %v4004_v16 = vpop.f32.mrb[28].mxu1 }
 0x1a2   :  { %v1819_v12 = vadd.f32 %v1818_v8, %v1817_v48  ;;  %v1833_v13 = vadd.f32 %v1832_v9, %v1831_v14  ;;  %v1637_v34 = vadd.f32 %v3846_v44, %v3910_v20  ;;  %v1639_v23 = vadd.f32 %v3848_v37, %v3912_v27  ;;  %v4010_v25 = vpop.f32.mrb[29].mxu0  ;;  %v4012_v24 = vpop.f32.mrb[29].mxu1 }
 0x1a3   :  { %v1826_v58 = vadd.f32 %v1825_v10, %v1824_v21  ;;  %v1840_v29 = vadd.f32 %v1839_v46, %v1838_v22  ;;  %v1638_v51 = vadd.f32 %v3850_v35, %v3922_v15  ;;  %v1640_v30 = vadd.f32 %v3852_v11, %v3924_v32  ;;  %v4018_v19 = vpop.f32.mrb[30].mxu0  ;;  %v4020_v26 = vpop.f32.mrb[30].mxu1 }
 0x1a4   :  { %v1965_v20 = vpack.c.bf16 %v1819_v12, %v1819_v12  ;;  %v1967_v61 = vpack.c.bf16 %v1833_v13, %v1833_v13  ;;  %v1701_v63 = vmax.f32 %v1637_v34, 0.0  ;;  %v1703_v27 = vmax.f32 %v1639_v23, 0.0  ;;  %v4022_v49 = vpop.f32.mrb[31].mxu0  ;;  %v4024_v4 = vpop.f32.mrb[31].mxu1 }
 0x1a5   :  { %v1966_v28 = vpack.c.bf16 %v1826_v58, %v1826_v58  ;;  %v1968_v48 = vpack.c.bf16 %v1840_v29, %v1840_v29  ;;  %v1702_v14 = vmax.f32 %v1638_v51, 0.0  ;;  %v1704_v31 = vmax.f32 %v1640_v30, 0.0 }
 0x1a6   :  { %v2100_v15 = vunpack.c.l.b16 %v1965_v20  ;;  %v2102_v40 = vunpack.c.l.b16 %v1967_v61  ;;  %v1841_v21 = vadd.f32 %v1701_v63, %v1697_v47  ;;  %v1855_v32 = vadd.f32 %v1703_v27, %v1699_v42 }
 0x1a7   :  { %v4026_v22 = vunpack.c.l.b16 %v1966_v28  ;;  %v4028_v36 = vunpack.c.l.b16 %v1968_v48  ;;  %v1848_v43 = vadd.f32 %v1702_v14, %v1698_v5  ;;  %v1862_v8 = vadd.f32 %v1704_v31, %v1700_v6 }
 0x1a8   :  { %v4031_v9 = vsel %vm2124_vm10, %v2100_v15, %v2123_v59  ;;  %v4034_v10 = vsel %vm2124_vm10, %v2102_v40, %v2142_v39  ;;  %v1842_v46 = vrot.slane %v1841_v21, 4  ;;  %v1856_v12 = vrot.slane %v1855_v32, 4 }
 0x1a9   :  { %v1849_v13 = vrot.slane %v1848_v43, 4  ;;  %v1863_v34 = vrot.slane %v1862_v8, 4  ;;  %v1641_v47 = vadd.f32 %v3846_v44, %v3942_v57  ;;  %v1643_v42 = vadd.f32 %v3848_v37, %v3944_v33 }
 0x1aa   :  { %v1843_v23 = vadd.f32 %v1842_v46, %v1841_v21  ;;  %v1857_v58 = vadd.f32 %v1856_v12, %v1855_v32  ;;  %v1642_v5 = vadd.f32 %v3850_v35, %v3950_v1  ;;  %v1644_v59 = vadd.f32 %v3852_v11, %v3952_v50 }
 0x1ab   :  { %v1850_v39 = vadd.f32 %v1849_v13, %v1848_v43  ;;  %v1864_v6 = vadd.f32 %v1863_v34, %v1862_v8  ;;  %v1705_v29 = vmax.f32 %v1641_v47, 0.0  ;;  %v1707_v51 = vmax.f32 %v1643_v42, 0.0 }
 0x1ac   :  { %v1844_v30 = vrot.slane %v1843_v23, 2  ;;  %v1858_v20 = vrot.slane %v1857_v58, 2  ;;  %v1706_v61 = vmax.f32 %v1642_v5, 0.0  ;;  %v1708_v63 = vmax.f32 %v1644_v59, 0.0 }
 0x1ad   :  { %v1851_v57 = vrot.slane %v1850_v39, 2  ;;  %v1865_v27 = vrot.slane %v1864_v6, 2  ;;  %v1645_v33 = vadd.f32 %v3846_v44, %v3958_v38  ;;  %v1647_v1 = vadd.f32 %v3848_v37, %v3960_v60 }
 0x1ae   :  { %v1845_v28 = vadd.f32 %v1844_v30, %v1843_v23  ;;  %v1859_v48 = vadd.f32 %v1858_v20, %v1857_v58  ;;  %v1646_v50 = vadd.f32 %v3850_v35, %v3962_v53  ;;  %v1648_v14 = vadd.f32 %v3852_v11, %v3964_v2 }
 0x1af   :  { %v1852_v31 = vadd.f32 %v1851_v57, %v1850_v39  ;;  %v1866_v15 = vadd.f32 %v1865_v27, %v1864_v6  ;;  %v1709_v40 = vmax.f32 %v1645_v33, 0.0  ;;  %v1711_v21 = vmax.f32 %v1647_v1, 0.0 }
 0x1b0   :  { %v1846_v32 = vrot.slane %v1845_v28, 1  ;;  %v1860_v43 = vrot.slane %v1859_v48, 1  ;;  %v1710_v8 = vmax.f32 %v1646_v50, 0.0  ;;  %v1712_v46 = vmax.f32 %v1648_v14, 0.0 }
 0x1b1   :  { %v1853_v38 = vrot.slane %v1852_v31, 1  ;;  %v1867_v12 = vrot.slane %v1866_v15, 1  ;;  %v1869_v13 = vadd.f32 %v1709_v40, %v1705_v29  ;;  %v1883_v60 = vadd.f32 %v1711_v21, %v1707_v51 }
 0x1b2   :  { %v1847_v34 = vadd.f32 %v1846_v32, %v1845_v28  ;;  %v1861_v47 = vadd.f32 %v1860_v43, %v1859_v48  ;;  %v1876_v42 = vadd.f32 %v1710_v8, %v1706_v61  ;;  %v1890_v23 = vadd.f32 %v1712_v46, %v1708_v63 }
 0x1b3   :  { %v1854_v53 = vadd.f32 %v1853_v38, %v1852_v31  ;;  %v1868_v58 = vadd.f32 %v1867_v12, %v1866_v15  ;;  %v1870_v5 = vrot.slane %v1869_v13, 4  ;;  %v1884_v2 = vrot.slane %v1883_v60, 4 }
 0x1b4   :  { %v1969_v59 = vpack.c.bf16 %v1847_v34, %v1847_v34  ;;  %v1971_v39 = vpack.c.bf16 %v1861_v47, %v1861_v47  ;;  %v1877_v6 = vrot.slane %v1876_v42, 4  ;;  %v1891_v30 = vrot.slane %v1890_v23, 4 }
 0x1b5   :  { %v1970_v20 = vpack.c.bf16 %v1854_v53, %v1854_v53  ;;  %v1972_v57 = vpack.c.bf16 %v1868_v58, %v1868_v58  ;;  %v1871_v27 = vadd.f32 %v1870_v5, %v1869_v13  ;;  %v1885_v33 = vadd.f32 %v1884_v2, %v1883_v60 }
 0x1b6   :  { %v2104_v1 = vunpack.c.l.b16 %v1969_v59  ;;  %v2106_v50 = vunpack.c.l.b16 %v1971_v39  ;;  %v1878_v29 = vadd.f32 %v1877_v6, %v1876_v42  ;;  %v1892_v51 = vadd.f32 %v1891_v30, %v1890_v23 }
 0x1b7   :  { %v4052_v28 = vunpack.c.l.b16 %v1970_v20  ;;  %v4054_v61 = vunpack.c.l.b16 %v1972_v57  ;;  %v1872_v63 = vrot.slane %v1871_v27, 2  ;;  %v1886_v48 = vrot.slane %v1885_v33, 2 }
 0x1b8   :  { %v4058_v14 = vsel %vm2126_vm11, %v2104_v1, %v4031_v9  ;;  %v4062_v31 = vsel %vm2126_vm11, %v2106_v50, %v4034_v10  ;;  %v1879_v15 = vrot.slane %v1878_v29, 2  ;;  %v1893_v40 = vrot.slane %v1892_v51, 2 }
 0x1b9   :  { %v1873_v21 = vadd.f32 %v1872_v63, %v1871_v27  ;;  %v1887_v32 = vadd.f32 %v1886_v48, %v1885_v33  ;;  %v1649_v43 = vadd.f32 %v3846_v44, %v3966_v17  ;;  %v1651_v8 = vadd.f32 %v3848_v37, %v3968_v55 }
 0x1ba   :  { %v1880_v46 = vadd.f32 %v1879_v15, %v1878_v29  ;;  %v1894_v38 = vadd.f32 %v1893_v40, %v1892_v51  ;;  %v1650_v9 = vadd.f32 %v3850_v35, %v3970_v52  ;;  %v1652_v12 = vadd.f32 %v3852_v11, %v3972_v54 }
 0x1bb   :  { %v1874_v10 = vrot.slane %v1873_v21, 1  ;;  %v1888_v13 = vrot.slane %v1887_v32, 1  ;;  %v1713_v60 = vmax.f32 %v1649_v43, 0.0  ;;  %v1715_v34 = vmax.f32 %v1651_v8, 0.0 }
 0x1bc   :  { %v1881_v47 = vrot.slane %v1880_v46, 1  ;;  %v1895_v42 = vrot.slane %v1894_v38, 1  ;;  %v1714_v23 = vmax.f32 %v1650_v9, 0.0  ;;  %v1716_v53 = vmax.f32 %v1652_v12, 0.0 }
 0x1bd   :  { %v1875_v17 = vadd.f32 %v1874_v10, %v1873_v21  ;;  %v1889_v58 = vadd.f32 %v1888_v13, %v1887_v32  ;;  %v1653_v55 = vadd.f32 %v3846_v44, %v3974_v62  ;;  %v1655_v5 = vadd.f32 %v3848_v37, %v3976_v56 }
 0x1be   :  { %v1882_v52 = vadd.f32 %v1881_v47, %v1880_v46  ;;  %v1896_v2 = vadd.f32 %v1895_v42, %v1894_v38  ;;  %v1654_v54 = vadd.f32 %v3850_v35, %v3982_v41  ;;  %v1656_v59 = vadd.f32 %v3852_v11, %v3984_v18 }
 0x1bf   :  { %v1973_v39 = vpack.c.bf16 %v1875_v17, %v1875_v17  ;;  %v1975_v6 = vpack.c.bf16 %v1889_v58, %v1889_v58  ;;  %v1717_v30 = vmax.f32 %v1653_v55, 0.0  ;;  %v1719_v20 = vmax.f32 %v1655_v5, 0.0 }
 0x1c0   :  { %v1974_v57 = vpack.c.bf16 %v1882_v52, %v1882_v52  ;;  %v1976_v27 = vpack.c.bf16 %v1896_v2, %v1896_v2  ;;  %v1718_v33 = vmax.f32 %v1654_v54, 0.0  ;;  %v1720_v1 = vmax.f32 %v1656_v59, 0.0 }
 0x1c1   :  { %v4080_v62 = vunpack.c.l.b16 %v1973_v39  ;;  %v4082_v50 = vunpack.c.l.b16 %v1975_v6  ;;  %v1897_v56 = vadd.f32 %v1717_v30, %v1713_v60  ;;  %v1911_v29 = vadd.f32 %v1719_v20, %v1715_v34 }
 0x1c2   :  { %v4084_v51 = vunpack.c.l.b16 %v1974_v57  ;;  %v4086_v41 = vunpack.c.l.b16 %v1976_v27  ;;  %v1904_v63 = vadd.f32 %v1718_v33, %v1714_v23  ;;  %v1918_v18 = vadd.f32 %v1720_v1, %v1716_v53 }
 0x1c3   :  { %v1898_v48 = vrot.slane %v1897_v56, 4  ;;  %v1912_v15 = vrot.slane %v1911_v29, 4  ;;  %v1657_v40 = vadd.f32 %v3846_v44, %v4002_v0  ;;  %v1659_v21 = vadd.f32 %v3848_v37, %v4004_v16 }
 0x1c4   :  { %v1905_v32 = vrot.slane %v1904_v63, 4  ;;  %v1919_v43 = vrot.slane %v1918_v18, 4  ;;  %v1658_v8 = vadd.f32 %v3850_v35, %v4010_v25  ;;  %v1660_v46 = vadd.f32 %v3852_v11, %v4012_v24 }
 0x1c5   :  { %v1899_v38 = vadd.f32 %v1898_v48, %v1897_v56  ;;  %v1913_v9 = vadd.f32 %v1912_v15, %v1911_v29  ;;  %v1721_v12 = vmax.f32 %v1657_v40, 0.0  ;;  %v1723_v10 = vmax.f32 %v1659_v21, 0.0 }
 0x1c6   :  { %v1906_v13 = vadd.f32 %v1905_v32, %v1904_v63  ;;  %v1920_v60 = vadd.f32 %v1919_v43, %v1918_v18  ;;  %v1722_v34 = vmax.f32 %v1658_v8, 0.0  ;;  %v1724_v47 = vmax.f32 %v1660_v46, 0.0 }
 0x1c7   :  { %v1900_v0 = vrot.slane %v1899_v38, 2  ;;  %v1914_v42 = vrot.slane %v1913_v9, 2  ;;  %v1661_v16 = vadd.f32 %v3846_v44, %v4018_v19  ;;  %v1663_v23 = vadd.f32 %v3848_v37, %v4020_v26 }
 0x1c8   :  { %v1907_v25 = vrot.slane %v1906_v13, 2  ;;  %v1921_v53 = vrot.slane %v1920_v60, 2  ;;  %v1662_v24 = vadd.f32 %v3850_v35, %v4022_v49  ;;  %v1664_v17 = vadd.f32 %v3852_v11, %v4024_v4 }
 0x1c9   :  { %v1901_v58 = vadd.f32 %v1900_v0, %v1899_v38  ;;  %v1915_v55 = vadd.f32 %v1914_v42, %v1913_v9  ;;  %v1725_v5 = vmax.f32 %v1661_v16, 0.0  ;;  %v1727_v52 = vmax.f32 %v1663_v23, 0.0 }
 0x1ca   :  { %v1908_v2 = vadd.f32 %v1907_v25, %v1906_v13  ;;  %v1922_v54 = vadd.f32 %v1921_v53, %v1920_v60  ;;  %v1726_v59 = vmax.f32 %v1662_v24, 0.0  ;;  %v1728_v39 = vmax.f32 %v1664_v17, 0.0 }
 0x1cb   :  { %v1902_v44 = vrot.slane %v1901_v58, 1  ;;  %v1916_v19 = vrot.slane %v1915_v55, 1  ;;  %v1925_v37 = vadd.f32 %v1725_v5, %v1721_v12  ;;  %v1939_v26 = vadd.f32 %v1727_v52, %v1723_v10 }
 0x1cc   :  { %v1909_v6 = vrot.slane %v1908_v2, 1  ;;  %v1923_v30 = vrot.slane %v1922_v54, 1  ;;  %v1932_v35 = vadd.f32 %v1726_v59, %v1722_v34  ;;  %v1946_v49 = vadd.f32 %v1728_v39, %v1724_v47 }
 0x1cd   :  { %v1903_v20 = vadd.f32 %v1902_v44, %v1901_v58  ;;  %v1917_v11 = vadd.f32 %v1916_v19, %v1915_v55  ;;  %v1926_v4 = vrot.slane %v1925_v37, 4  ;;  %v1940_v57 = vrot.slane %v1939_v26, 4 }
 0x1ce   :  { %v1910_v27 = vadd.f32 %v1909_v6, %v1908_v2  ;;  %v1924_v33 = vadd.f32 %v1923_v30, %v1922_v54  ;;  %v1933_v1 = vrot.slane %v1932_v35, 4  ;;  %v1947_v56 = vrot.slane %v1946_v49, 4 }
 0x1cf   :  { %v1977_v29 = vpack.c.bf16 %v1903_v20, %v1903_v20  ;;  %v1979_v63 = vpack.c.bf16 %v1917_v11, %v1917_v11  ;;  %v1927_v18 = vadd.f32 %v1926_v4, %v1925_v37  ;;  %v1941_v48 = vadd.f32 %v1940_v57, %v1939_v26  ;;  %v3063_v4 = vld [vmem:[%s4157_s5 + $0x8] sm:$0xff]   ;;  %v3064_v57 = vld [vmem:[%s4157_s5 + $0x10] sm:$0xff]  }
 0x1d0   :  { %v1978_v15 = vpack.c.bf16 %v1910_v27, %v1910_v27  ;;  %v1980_v40 = vpack.c.bf16 %v1924_v33, %v1924_v33  ;;  %v1934_v21 = vadd.f32 %v1933_v1, %v1932_v35  ;;  %v1948_v32 = vadd.f32 %v1947_v56, %v1946_v49  ;;  %v3062_v49 = vld [vmem:[%s4157_s5] sm:$0xff]   ;;  %v3065_v27 = vld [vmem:[%s4157_s5 + $0x18] sm:$0xff]  }
 0x1d1   :  { %v2112_v43 = vunpack.c.l.b16 %v1977_v29  ;;  %v2114_v8 = vunpack.c.l.b16 %v1979_v63  ;;  %v1928_v46 = vrot.slane %v1927_v18, 2  ;;  %v1942_v38 = vrot.slane %v1941_v48, 2  ;;  %v2707_v56 = vld [vmem:[%s4158_s4] ss:$0 sm:$0xff] }
 0x1d2   :  { %v2113_v9 = vunpack.c.l.b16 %v1978_v15  ;;  %v2115_v12 = vunpack.c.l.b16 %v1980_v40  ;;  %v1935_v10 = vrot.slane %v1934_v21, 2  ;;  %v1949_v13 = vrot.slane %v1948_v32, 2 }
 0x1d3   :  { %v1929_v60 = vadd.f32 %v1928_v46, %v1927_v18  ;;  %v1943_v34 = vadd.f32 %v1942_v38, %v1941_v48  ;;  %v2136_v47 = vsel %vm2124_vm10, %v4026_v22, %v3988_v7  ;;  %v2150_v0 = vsel %vm2124_vm10, %v4028_v36, %v3992_v3  ;;  %v2740_v38 = vld [vmem:[%s4159_s6] ss:$0 sm:$0xff] }
 0x1d4   :  { %v1936_v42 = vadd.f32 %v1935_v10, %v1934_v21  ;;  %v1950_v16 = vadd.f32 %v1949_v13, %v1948_v32  ;;  %v2137_v23 = vsel %vm2126_vm11, %v4052_v28, %v2136_v47  ;;  %v2151_v25 = vsel %vm2126_vm11, %v4054_v61, %v2150_v0 }
 0x1d5   :  { %v1930_v53 = vrot.slane %v1929_v60, 1  ;;  %v1944_v24 = vrot.slane %v1943_v34, 1  ;;  %v2138_v17 = vsel %vm2128_vm12, %v4084_v51, %v2137_v23  ;;  %v2152_v7 = vsel %vm2128_vm12, %v4086_v41, %v2151_v25 }
 0x1d6   :  { %v1937_v22 = vrot.slane %v1936_v42, 1  ;;  %v1951_v58 = vrot.slane %v1950_v16, 1  ;;  %v2139_v3 = vsel %vm2130_vm13, %v2113_v9, %v2138_v17  ;;  %v2153_v36 = vsel %vm2130_vm13, %v2115_v12, %v2152_v7 }
 0x1d7   :  { %v1931_v55 = vadd.f32 %v1930_v53, %v1929_v60  ;;  %v1945_v5 = vadd.f32 %v1944_v24, %v1943_v34  ;;  %v2129_v28 = vsel %vm2128_vm12, %v4080_v62, %v4058_v14  ;;  %v2145_v61 = vsel %vm2128_vm12, %v4082_v50, %v4062_v31 }
 0x1d8   :  { %v1938_v51 = vadd.f32 %v1937_v22, %v1936_v42  ;;  %v1952_v52 = vadd.f32 %v1951_v58, %v1950_v16  ;;  %v2131_v41 = vsel %vm2130_vm13, %v2112_v43, %v2129_v28  ;;  %v2146_v2 = vsel %vm2130_vm13, %v2114_v8, %v2145_v61 }
 0x1d9   :  { %v1981_v54 = vpack.c.bf16 %v1931_v55, %v1931_v55  ;;  %v1983_v59 = vpack.c.bf16 %v1945_v5, %v1945_v5 }
 0x1da   :  { %v1982_v39 = vpack.c.bf16 %v1938_v51, %v1938_v51  ;;  %v1984_v44 = vpack.c.bf16 %v1952_v52, %v1952_v52 }
 0x1db   :  { %v2116_v19 = vunpack.c.l.b16 %v1981_v54  ;;  %v2118_v37 = vunpack.c.l.b16 %v1983_v59 }
 0x1dc   :  { %v2117_v26 = vunpack.c.l.b16 %v1982_v39  ;;  %v2119_v6 = vunpack.c.l.b16 %v1984_v44 }
 0x1dd   :  { %v2133_v14 = vsel %vm2132_vm14, %v2116_v19, %v2131_v41  ;;  %v2147_v62 = vsel %vm2132_vm14, %v2118_v37, %v2146_v2 }
 0x1de   :  { %v2140_v30 = vsel %vm2132_vm14, %v2117_v26, %v2139_v3  ;;  %v2154_v35 = vsel %vm2132_vm14, %v2119_v6, %v2153_v36  ;;  %v2155_v20 = vpack.c.b16 %v2133_v14, %v2133_v14  ;;  %v2157_v11 = vpack.c.b16 %v2147_v62, %v2147_v62 }
 0x1df   :  { %v2156_v31 = vpack.c.b16 %v2140_v30, %v2140_v30  ;;  %v2158_v50 = vpack.c.b16 %v2154_v35, %v2154_v35 }
 0x1e1   :  { %2387 = vmatprep.mubr.bf16.mxu0 %v2156_v31  ;;  %2427 = vmatprep.mubr.bf16.mxu1 %v2158_v50 }
 0x1e2   :  { %2388 = vmatmul.mubr.bf16.vlgmr.msra.gmra.mrb[32].mxu0 %v2155_v20  ;;  %2428 = vmatmul.mubr.bf16.vlgmr.msra.gmra.mrb[32].mxu1 %v2157_v11 }
 0x1e3   :  { %2796 = vmatpush3.bf16.msra.mxu0 %v3062_v49  ;;  %2803 = vmatprep.mubr.msk.bf16.mxu0 %vm3068_vm15, %v3067_v45 }
 0x1e4   :  { %2797 = vmatprep.subr.bf16.mxu0 %v3067_v45 }
 0x1e7   :  { %2798 = vmatpush3.bf16.msra.mxu0 %v3063_v4 }
 0x1e8   :  { %2799 = vmatprep.subr.bf16.mxu0 %v3067_v45 }
 0x1eb   :  { %2800 = vmatpush3.bf16.msra.mxu0 %v3064_v57 }
 0x1ec   :  { %2801 = vmatprep.subr.bf16.mxu0 %v3067_v45 }
 0x1ef   :  { %2802 = vmatpush3.bf16.msra.mxu0 %v3065_v27 }
 0x2b5   :  { %v2762_v33 = vpop.f32.mrb[32].mxu0  ;;  %v2784_v1 = vpop.f32.mrb[32].mxu1 }
 0x2b6   :  { %v2763_v29 = vpop.f32.mrb[33].mxu0  ;;  %v2785_v63 = vpop.f32.mrb[33].mxu1 }
 0x2b7   :  { %v2764_v18 = vadd.f32 %v2763_v29, %v2762_v33  ;;  %v2786_v48 = vadd.f32 %v2785_v63, %v2784_v1  ;;  %v2765_v15 = vpop.f32.mrb[34].mxu0  ;;  %v2787_v40 = vpop.f32.mrb[34].mxu1 }
 0x2b8   :  { %v2766_v21 = vpop.f32.mrb[35].mxu0  ;;  %v2788_v32 = vpop.f32.mrb[35].mxu1 }
 0x2b9   :  { %v2390_v43 = vadd.f32 %v2764_v18, %v2707_v56 }
 0x2bb   :  { %v2430_v8 = vadd.f32 %v2786_v48, %v2390_v43 }
 0x2bd   :  { %v2435_v46 = vmax.f32 %v2430_v8, 0.0 }
 0x2bf   :  { %v2436_v45 = vpack.c.bf16 %v2435_v46, %v2435_v46 }
 0x2c1   :  { %2804 = vmatmul.mubr.msk.bf16.vlgmr.msra.gmra.mrb[36].mxu0 %vm2476_vm0, %v2436_v45 }
 0x394   :  { %v2514_v9 = vpop.f32.mrb[36].mxu0 }
 0x395   :  { %v2515_v12 = vadd.f32 %v2740_v38, %v2514_v9  ;;  %v2805_v10 = vpop.f32.mrb[37].mxu0 }
 0x396   :  { %v2517_v13 = vpop.f32.mrb[38].mxu0 }
 0x397   :  { %2520 = vst [vmem:[%s4160_s7] sm:$0xff] %v2515_v12  ;;  %v2806_v60 = vpop.f32.mrb[39].mxu0 }

</bundles_post_ra>
